<compile_context>
chip_gen: v7x
topology: tpu7x:2x2x1
jax: 0.10.0
libtpu: 0.0.40
codegen_flags: <defaults>
</compile_context>

<pallas_src>
import functools

import jax
import jax.numpy as jnp
from jax.experimental import pallas as pl
from jax.experimental.pallas import tpu as pltpu

BN_EPS = 1e-5
_COMPILER_PARAMS = pltpu.CompilerParams(
    dimension_semantics=("parallel",),
    vmem_limit_bytes=32 * 1024 * 1024,
)


# ----------------------------- kernels ------------------------------------ #
def conv_stage_kernel(x_ref, w_ref, scale_ref, shift_ref, y_ref, stats_ref,
                      *, H, W, fuse_bn_relu):
    """One batch sample: [optional fused BN(scale,shift)+ReLU] -> 3x3 valid conv.

    x_ref:     (1, H*W, Ci)   input feature map (flattened spatial)
    w_ref:     (9*Ci, Co)     pre-flattened conv weights (ky, kx, ci) x co
    scale_ref: (1, Ci)        BN scale for the *input* (used iff fuse_bn_relu)
    shift_ref: (1, Ci)        BN shift for the *input* (used iff fuse_bn_relu)
    y_ref:     (1, Ho*Wo, Co) conv output (f32, bias-free: cancelled by BN)
    stats_ref: (1, 2, Co)     per-sample [sum, sum-of-squares] of conv output
    """
    Ho, Wo = H - 2, W - 2
    Ci = x_ref.shape[-1]
    x = x_ref[0].reshape(H, W, Ci).astype(jnp.float32)

    if fuse_bn_relu:
        # Fused BatchNorm (precomputed scale/shift) + ReLU of the previous stage.
        x = jnp.maximum(x * scale_ref[...] + shift_ref[...], 0.0)

    # im2col: build one patch matrix and run a single MXU matmul
    # (instead of 9 tiny K=Ci matmuls + 9 full-tensor adds).
    pm = jnp.concatenate(
        [x[dy:dy + Ho, dx:dx + Wo, :] for dy in range(3) for dx in range(3)],
        axis=-1,
    ).reshape(Ho * Wo, 9 * Ci)
    y = jnp.dot(pm, w_ref[...], preferred_element_type=jnp.float32)  # (Ho*Wo, Co)

    y_ref[0] = y

    # Single-pass BN statistics in f32 (E[x^2] - E[x]^2 finalized outside).
    s = jnp.sum(y, axis=0, keepdims=True)
    ss = jnp.sum(y * y, axis=0, keepdims=True)
    stats_ref[0] = jnp.concatenate([s, ss], axis=0)


def bn_relu_out_kernel(z_ref, scale_ref, shift_ref, o_ref):
    """Final BN+ReLU, stored channel-major so the lane axis is dense (Ho2*Wo2)."""
    z = jnp.maximum(z_ref[0] * scale_ref[...] + shift_ref[...], 0.0)  # (Hs, C)
    o_ref[0] = z.T.astype(o_ref.dtype)                                # (C, Hs)


# ----------------------------- wrappers ------------------------------------ #
def _conv_stage(x, w_flat, scale, shift, *, N, H, W, Ci, Co, fuse_bn_relu):
    Ho, Wo = H - 2, W - 2
    kernel = functools.partial(conv_stage_kernel, H=H, W=W,
                               fuse_bn_relu=fuse_bn_relu)
    return pl.pallas_call(
        kernel,
        grid=(N,),
        in_specs=[
            pl.BlockSpec((1, H * W, Ci), lambda i: (i, 0, 0)),
            pl.BlockSpec((9 * Ci, Co), lambda i: (0, 0)),
            pl.BlockSpec((1, Ci), lambda i: (0, 0)),
            pl.BlockSpec((1, Ci), lambda i: (0, 0)),
        ],
        out_specs=(
            pl.BlockSpec((1, Ho * Wo, Co), lambda i: (i, 0, 0)),
            pl.BlockSpec((1, 2, Co), lambda i: (i, 0, 0)),
        ),
        out_shape=(
            jax.ShapeDtypeStruct((N, Ho * Wo, Co), jnp.float32),
            jax.ShapeDtypeStruct((N, 2, Co), jnp.float32),
        ),
        compiler_params=_COMPILER_PARAMS,
    )(x, w_flat, scale, shift)


def _bn_relu_out(z, scale, shift, *, N, Hs, C, out_dtype):
    return pl.pallas_call(
        bn_relu_out_kernel,
        grid=(N,),
        in_specs=[
            pl.BlockSpec((1, Hs, C), lambda i: (i, 0, 0)),
            pl.BlockSpec((1, C), lambda i: (0, 0)),
            pl.BlockSpec((1, C), lambda i: (0, 0)),
        ],
        out_specs=pl.BlockSpec((1, C, Hs), lambda i: (i, 0, 0)),
        out_shape=jax.ShapeDtypeStruct((N, C, Hs), out_dtype),
        compiler_params=_COMPILER_PARAMS,
    )(z, scale, shift)


def _bn_scale_shift(stats, count):
    """Reduce per-sample [sum, sumsq] -> per-channel BN scale/shift (tiny glue)."""
    s = jnp.sum(stats[:, 0, :], axis=0)
    ss = jnp.sum(stats[:, 1, :], axis=0)
    mean = s / count
    var = jnp.maximum(ss / count - mean * mean, 0.0)   # biased variance, f32
    scale = jax.lax.rsqrt(var + BN_EPS)
    shift = -mean * scale
    c = s.shape[0]
    return scale.reshape(1, c), shift.reshape(1, c)


def double_conv(x_nchw, w1, b1, w2, b2):
    """x_nchw: (N,Cin,H,W); w1:(Cmid,Cin,3,3); w2:(Cout,Cmid,3,3) (PyTorch OIHW).

    b1/b2 are accepted for API parity but are not applied: training-mode
    BatchNorm (gamma=1, beta=0) subtracts the batch mean, which cancels a
    per-channel constant bias exactly, so the output is identical.
    """
    del b1, b2
    N, Cin, H, W = x_nchw.shape
    Cmid = w1.shape[0]
    Cout = w2.shape[0]
    Ho, Wo = H - 2, W - 2
    Ho2, Wo2 = Ho - 2, Wo - 2

    # Layout plumbing in plain JAX (hoisted out of the kernels).
    x = jnp.transpose(x_nchw, (0, 2, 3, 1)).reshape(N, H * W, Cin)
    x = x.astype(jnp.float32)
    w1f = jnp.transpose(w1, (2, 3, 1, 0)).reshape(9 * Cin, Cmid).astype(jnp.float32)
    w2f = jnp.transpose(w2, (2, 3, 1, 0)).reshape(9 * Cmid, Cout).astype(jnp.float32)
    ident_scale = jnp.ones((1, Cin), jnp.float32)
    ident_shift = jnp.zeros((1, Cin), jnp.float32)

    # Stage 1: conv1 + fused per-channel sum/sumsq.
    y, stats1 = _conv_stage(x, w1f, ident_scale, ident_shift,
                            N=N, H=H, W=W, Ci=Cin, Co=Cmid, fuse_bn_relu=False)
    scale1, shift1 = _bn_scale_shift(stats1, N * Ho * Wo)

    # Stage 2: BN1+ReLU fused into conv2's prologue, + fused stats for BN2.
    z, stats2 = _conv_stage(y, w2f, scale1, shift1,
                            N=N, H=Ho, W=Wo, Ci=Cmid, Co=Cout, fuse_bn_relu=True)
    scale2, shift2 = _bn_scale_shift(stats2, N * Ho2 * Wo2)

    # Stage 3: BN2+ReLU with a lane-dense channel-major store -> already NCHW.
    out = _bn_relu_out(z, scale2, shift2,
                       N=N, Hs=Ho2 * Wo2, C=Cout, out_dtype=x_nchw.dtype)
    return out.reshape(N, Cout, Ho2, Wo2)


# ------------- deterministic parameter init (matches module __init__) ------ #
def xavier_uniform(key, cout, cin, k=3):
    fan_in = cin * k * k
    fan_out = cout * k * k
    bound = (6.0 / (fan_in + fan_out)) ** 0.5
    return jax.random.uniform(key, (cout, cin, k, k), jnp.float32, -bound, bound)


def conv_bias(key, cout, cin, k=3):
    bound = 1.0 / (cin * k * k) ** 0.5
    return jax.random.uniform(key, (cout,), jnp.float32, -bound, bound)


# ------------------- pure-JAX reference for correctness -------------------- #
def _reference(x, w1, b1, w2, b2):
    def conv(x, w, b):
        y = jax.lax.conv_general_dilated(
            x, w, window_strides=(1, 1), padding="VALID",
            dimension_numbers=("NCHW", "OIHW", "NCHW"))
        return y + b.reshape(1, -1, 1, 1)

    def bn_relu(y):
        mean = jnp.mean(y, axis=(0, 2, 3), keepdims=True)
        var = jnp.mean((y - mean) ** 2, axis=(0, 2, 3), keepdims=True)
        return jnp.maximum((y - mean) * jax.lax.rsqrt(var + BN_EPS), 0.0)

    y = bn_relu(conv(x, w1, b1))
    return bn_relu(conv(y, w2, b2))


if __name__ == "__main__":
    key = jax.random.PRNGKey(0)
    k_x, k_w1, k_b1, k_w2, k_b2 = jax.random.split(key, 5)

    # DoubleConv(in_channels=4, out_channels=8)  -> mid_channels = 8
    N, Cin, Cout, H, W = 2, 4, 8, 16, 16
    x = jax.random.normal(k_x, (N, Cin, H, W), jnp.float32)
    w1 = xavier_uniform(k_w1, Cout, Cin)
    b1 = conv_bias(k_b1, Cout, Cin)
    w2 = xavier_uniform(k_w2, Cout, Cout)
    b2 = conv_bias(k_b2, Cout, Cout)

    out = double_conv(x, w1, b1, w2, b2)
    out = jax.block_until_ready(out)
    assert out.shape == (N, Cout, H - 4, W - 4), out.shape

    ref = _reference(x, w1, b1, w2, b2)
    assert jnp.allclose(out, ref, rtol=1e-4, atol=1e-4), float(
        jnp.max(jnp.abs(out - ref)))

    print("KERNEL_OK")
</pallas_src>

<mosaic_0001>
module attributes {stable_mosaic.version = 11 : i64} {
  func.func @conv_stage_kernel(%arg0: i32, %arg1: memref<1x256x4xf32, #tpu.memory_space<vmem>>, %arg2: memref<36x8xf32, #tpu.memory_space<vmem>>, %arg3: memref<1x4xf32, #tpu.memory_space<vmem>>, %arg4: memref<1x4xf32, #tpu.memory_space<vmem>>, %arg5: memref<1x196x8xf32, #tpu.memory_space<vmem>>, %arg6: memref<1x2x8xf32, #tpu.memory_space<vmem>>) attributes {dimension_semantics = [#tpu.dimension_semantics<parallel>], iteration_bounds = array<i64: 2>, scalar_prefetch = 0 : i64, scratch_operands = 0 : i64, tpu.core_type = #tpu.core_type<tc>, window_params = [{transform_indices = @transform_0, window_bounds = array<i64: 1, 256, 4>}, {pipeline_mode = #tpu.pipeline_mode<synchronous>, transform_indices = @transform_1, window_bounds = array<i64: 36, 8>}, {pipeline_mode = #tpu.pipeline_mode<synchronous>, transform_indices = @transform_2, window_bounds = array<i64: 1, 4>}, {pipeline_mode = #tpu.pipeline_mode<synchronous>, transform_indices = @transform_3, window_bounds = array<i64: 1, 4>}, {transform_indices = @transform_4, window_bounds = array<i64: 1, 196, 8>}, {transform_indices = @transform_5, window_bounds = array<i64: 1, 2, 8>}]} {
    %c0 = arith.constant 0 : index
    %c0_0 = arith.constant 0 : index
    %c0_1 = arith.constant 0 : index
    %0 = vector.load %arg1[%c0, %c0_0, %c0_1] : memref<1x256x4xf32, #tpu.memory_space<vmem>>, vector<1x256x4xf32>
    %1 = vector.shape_cast %0 : vector<1x256x4xf32> to vector<256x4xf32>
    %2 = vector.shape_cast %1 : vector<256x4xf32> to vector<16x16x4xf32>
    %3 = vector.extract_strided_slice %2 {offsets = [0, 0, 0], sizes = [14, 14, 4], strides = [1, 1, 1]} : vector<16x16x4xf32> to vector<14x14x4xf32>
    %4 = vector.extract_strided_slice %2 {offsets = [0, 1, 0], sizes = [14, 14, 4], strides = [1, 1, 1]} : vector<16x16x4xf32> to vector<14x14x4xf32>
    %5 = vector.extract_strided_slice %2 {offsets = [0, 2, 0], sizes = [14, 14, 4], strides = [1, 1, 1]} : vector<16x16x4xf32> to vector<14x14x4xf32>
    %6 = vector.extract_strided_slice %2 {offsets = [1, 0, 0], sizes = [14, 14, 4], strides = [1, 1, 1]} : vector<16x16x4xf32> to vector<14x14x4xf32>
    %7 = vector.extract_strided_slice %2 {offsets = [1, 1, 0], sizes = [14, 14, 4], strides = [1, 1, 1]} : vector<16x16x4xf32> to vector<14x14x4xf32>
    %8 = vector.extract_strided_slice %2 {offsets = [1, 2, 0], sizes = [14, 14, 4], strides = [1, 1, 1]} : vector<16x16x4xf32> to vector<14x14x4xf32>
    %9 = vector.extract_strided_slice %2 {offsets = [2, 0, 0], sizes = [14, 14, 4], strides = [1, 1, 1]} : vector<16x16x4xf32> to vector<14x14x4xf32>
    %10 = vector.extract_strided_slice %2 {offsets = [2, 1, 0], sizes = [14, 14, 4], strides = [1, 1, 1]} : vector<16x16x4xf32> to vector<14x14x4xf32>
    %11 = vector.extract_strided_slice %2 {offsets = [2, 2, 0], sizes = [14, 14, 4], strides = [1, 1, 1]} : vector<16x16x4xf32> to vector<14x14x4xf32>
    %12 = tpu.concatenate %3, %4, %5, %6, %7, %8, %9, %10, %11 in 2 : vector<14x14x4xf32>, vector<14x14x4xf32>, vector<14x14x4xf32>, vector<14x14x4xf32>, vector<14x14x4xf32>, vector<14x14x4xf32>, vector<14x14x4xf32>, vector<14x14x4xf32>, vector<14x14x4xf32> -> vector<14x14x36xf32>
    %13 = vector.shape_cast %12 : vector<14x14x36xf32> to vector<196x36xf32>
    %c0_2 = arith.constant 0 : index
    %c0_3 = arith.constant 0 : index
    %14 = vector.load %arg2[%c0_2, %c0_3] : memref<36x8xf32, #tpu.memory_space<vmem>>, vector<36x8xf32>
    %cst = arith.constant dense<0.000000e+00> : vector<196x8xf32>
    %15 = tpu.matmul %13, %14, %cst {dimension_numbers = #tpu.dot_dimension_numbers<[1], [0], [0], [1], [0, 0, 1, 1], [], []>} : vector<196x36xf32>, vector<36x8xf32>, vector<196x8xf32> -> vector<196x8xf32>
    %c0_4 = arith.constant 0 : index
    %c0_5 = arith.constant 0 : index
    %c0_6 = arith.constant 0 : index
    %16 = vector.load %arg5[%c0_4, %c0_5, %c0_6] : memref<1x196x8xf32, #tpu.memory_space<vmem>>, vector<1x196x8xf32>
    %17 = vector.shape_cast %16 : vector<1x196x8xf32> to vector<196x8xf32>
    %18 = vector.shape_cast %15 : vector<196x8xf32> to vector<1x196x8xf32>
    tpu.vector_store %arg5[%c0_4, %c0_5, %c0_6], %18 {strides = array<i32>} : memref<1x196x8xf32, #tpu.memory_space<vmem>>, vector<1x196x8xf32>,
    %cst_7 = arith.constant dense<0.000000e+00> : vector<8xf32>
    %19 = vector.multi_reduction <add>, %15, %cst_7 [0] : vector<196x8xf32> to vector<8xf32>
    %20 = vector.shape_cast %19 : vector<8xf32> to vector<1x8xf32>
    %21 = arith.mulf %15, %15 : vector<196x8xf32>
    %cst_8 = arith.constant dense<0.000000e+00> : vector<8xf32>
    %22 = vector.multi_reduction <add>, %21, %cst_8 [0] : vector<196x8xf32> to vector<8xf32>
    %23 = vector.shape_cast %22 : vector<8xf32> to vector<1x8xf32>
    %24 = tpu.concatenate %20, %23 in 0 : vector<1x8xf32>, vector<1x8xf32> -> vector<2x8xf32>
    %c0_9 = arith.constant 0 : index
    %c0_10 = arith.constant 0 : index
    %c0_11 = arith.constant 0 : index
    %25 = vector.load %arg6[%c0_9, %c0_10, %c0_11] : memref<1x2x8xf32, #tpu.memory_space<vmem>>, vector<1x2x8xf32>
    %26 = vector.shape_cast %25 : vector<1x2x8xf32> to vector<2x8xf32>
    %27 = vector.shape_cast %24 : vector<2x8xf32> to vector<1x2x8xf32>
    tpu.vector_store %arg6[%c0_9, %c0_10, %c0_11], %27 {strides = array<i32>} : memref<1x2x8xf32, #tpu.memory_space<vmem>>, vector<1x2x8xf32>,
    return
  }
  func.func @transform_0(%arg0: i32) -> (i32, i32, i32) {
    %c0_i32 = arith.constant 0 : i32
    %c0_i32_0 = arith.constant 0 : i32
    %c0_i32_1 = arith.constant 0 : i32
    return %arg0, %c0_i32, %c0_i32_0 : i32, i32, i32
  }
  func.func @transform_1(%arg0: i32) -> (i32, i32) {
    %c0_i32 = arith.constant 0 : i32
    %c0_i32_0 = arith.constant 0 : i32
    %c0_i32_1 = arith.constant 0 : i32
    return %c0_i32, %c0_i32_0 : i32, i32
  }
  func.func @transform_2(%arg0: i32) -> (i32, i32) {
    %c0_i32 = arith.constant 0 : i32
    %c0_i32_0 = arith.constant 0 : i32
    %c0_i32_1 = arith.constant 0 : i32
    return %c0_i32, %c0_i32_0 : i32, i32
  }
  func.func @transform_3(%arg0: i32) -> (i32, i32) {
    %c0_i32 = arith.constant 0 : i32
    %c0_i32_0 = arith.constant 0 : i32
    %c0_i32_1 = arith.constant 0 : i32
    return %c0_i32, %c0_i32_0 : i32, i32
  }
  func.func @transform_4(%arg0: i32) -> (i32, i32, i32) {
    %c0_i32 = arith.constant 0 : i32
    %c0_i32_0 = arith.constant 0 : i32
    %c0_i32_1 = arith.constant 0 : i32
    return %arg0, %c0_i32, %c0_i32_0 : i32, i32, i32
  }
  func.func @transform_5(%arg0: i32) -> (i32, i32, i32) {
    %c0_i32 = arith.constant 0 : i32
    %c0_i32_0 = arith.constant 0 : i32
    %c0_i32_1 = arith.constant 0 : i32
    return %arg0, %c0_i32, %c0_i32_0 : i32, i32, i32
  }
}

</mosaic_0001>

<bundles_post_ra>
// kernel: tpu_custom_call.1
= control target key start
LH: loop header
LB: loop body
LE: loop exit
PB: predicated region body
PF: predicated region fallthrough
CT: control target
= control target key end

     0   :  { %11 = vsyncpa [#allocation3], 0  ;;  %s4780_s0 = inlined_call_operand.vmem [shape: f32[2,256,4], index: 0, kind: input, shape index: {}]   ;;  %s4781_s1 = inlined_call_operand.vmem [shape: f32[36,8], index: 1, kind: input, shape index: {}]   ;;  %s4782_s2 = inlined_call_operand.vmem [shape: f32[1,4], index: 2, kind: input, shape index: {}]   ;;  %s4783_s3 = inlined_call_operand.vmem [shape: f32[1,4], index: 3, kind: input, shape index: {}]   ;;  %s4784_s4 = inlined_call_operand.vmem [shape: f32[2,196,8], index: 4, kind: output, shape index: {0}]   ;;  %s4785_s5 = inlined_call_operand.hbm [shape: f32[2,2,8], index: 5, kind: output, shape index: {1}]  }
   0x1   :  { %13 = vsyncpa [#allocation3 + $0x1], 0  ;;  %s3074_s18 = smov 0   ;;  %s3076_s19 = smov 0  }
   0x2   :  { %s3078_s20 = smov 0   ;;  %s3080_s21 = smov 0  }
   0x3 LB: > { %s3095_s2 = sadd.s32 4294967295, %s3029_s21   ;;  %s2729_s3 = sadd.s32 4294967294, %s3029_s21   ;;  %s3029_s21 = sphi %s3080_s21, %s4866_s21   ;;  %s3025_s20 = sphi %s3078_s20, %s4865_s20   ;;  %s3021_s19 = sphi %s3076_s19, %s4864_s19   ;;  %s3017_s18 = sphi %s3074_s18, %s4863_s18  }
   0x4   : > { %s3099_s22 = sadd.s32 1, %s3029_s21   ;;  %s141_s23 = sadd.s32 1, %s3025_s20 }
   0x5   : > { %s138_s24 = ssub.s32 %s3029_s21, %s3099_s22  ;;  %p151_p0 = scmp.ne.s32.totalorder %s3025_s20, %s3021_s19 }
   0x6   : > { %p139_p1 = scmp.eq.s32.totalorder %s138_s24, 0  ;;  %p152_p2 = scmp.eq.s32.totalorder %s3095_s2, 1 }
   0x7   : > { %p157_p3 = scmp.ne.s32.totalorder %s3021_s19, %s3017_s18  ;;  %p158_p4 = scmp.eq.s32.totalorder %s2729_s3, 1 }
   0x8   : > { %s3110_s25 = scalar_select %p139_p1, %s3025_s20, %s141_s23  }
   0x9   : > { %p3112_p5 = por %p152_p2, %p151_p0  ;;  %p3116_p6 = por %p158_p4, %p157_p3 }
   0xa   : > { %p2732_p7 = scmp.ge.s32.totalorder %s3029_s21, 1  ;;  %p193_p8 = scmp.lt.s32.totalorder %s3029_s21, 3 }
   0xc   : > { %p194_p9 = pnand %p2732_p7, %p193_p8 }
   0xe   : > { %197 = sbr.rel (%p194_p9) target bundleno = 848 (0x350), region = 36 }
  0x15   : > { %p226_p10 = scmp.lt.s32.totalorder %s3095_s2, 1  ;;  %vm296_vm0 = vcmask 1046528   ;;  %s3031_s8 = smov 4   ;;  %vm423_vm1 = vcmask 1045504   ;;  %vm2264_vm2 = vcmask 1043456   ;;  %vm3040_vm3 = vmmov 0  }
  0x16   : > { %s3032_s9 = smov 8   ;;  %s3033_s10 = smov 12   ;;  %vm1099_vm4 = vcmask 64512   ;;  %vm1070_vm5 = vcmask 31744   ;;  %vm1128_vm6 = vcmask 97280   ;;  %vm1157_vm7 = vcmask 130048  }
  0x17   : > { %s3124_s28 = scalar_select %p226_p10, %s3095_s2, 1  ;;  %vm1186_vm8 = vcmask 162816   ;;  %vm1215_vm9 = vcmask 195584   ;;  %vm1244_vm10 = vcmask 228352   ;;  %vm1273_vm11 = vcmask 261120  }
  0x18   : > { %s3035_s15 = smov 20   ;;  %s3036_s16 = smov 16   ;;  %vm2213_vm12 = vcmask 293888   ;;  %vm2482_vm13 = vcmask 60416   ;;  %vm2619_vm14 = vcmask 1040384   ;;  %vm2621_vm15 = vcmask 58368  }
  0x19   : > { %s2767_s29 = sshll.u32 %s3124_s28, 8  ;;  %s3038_s30 = smov 24  }
  0x1a   : > { %s3130_s7 = scalar_lea.vmem %s4780_s0, %s2767_s29  ;;  %s3037_s29 = smov 28  }
  0x1b   : > { %v3133_v0 = vld [vmem:[%s3130_s7 + $0x18] sm:$0xff]  ;;  %v3136_v1 = vld [vmem:[%s3130_s7 + $0x8] sm:$0xff]  ;;  %v3146_v5 = vld [vmem:[%s3130_s7] sm:$0xff]  ;;  %s3041_s11 = smov 32   ;;  %s2895_s12 = smul.u32 200, %s3124_s28 }
  0x1c   : > { %v3139_v2 = vld [vmem:[%s3130_s7 + $0x28] sm:$0xff]  ;;  %v3142_v3 = vrot.slane %v3133_v0, 1  ;;  %v298_v4 = vrot.slane %v3136_v1, 1  ;;  %v3149_v6 = vld [vmem:[%s3130_s7 + $0x10] sm:$0xff]  ;;  %v3152_v7 = vld [vmem:[%s3130_s7 + $0x20] sm:$0xff]  ;;  %v297_v8 = vrot.slane %v3146_v5, 1 }
  0x1d   : > { %v3159_v9 = vrot.slane %v3139_v2, 1  ;;  %v300_v11 = vrot.slane %v3149_v6, 1  ;;  %v303_v12 = vrot.slane %v3152_v7, 1  ;;  %v3165_v13 = vld [vmem:[%s3130_s7 + $0x38] sm:$0xff]  ;;  %v3168_v14 = vld [vmem:[%s3130_s7 + $0x30] sm:$0xff]  ;;  %v3186_v19 = vld [vmem:[%s3130_s7 + $0x48] sm:$0xff]  ;;  %s4297_s14 = scalar_lea.vmem %s4784_s4, %s2895_s12 }
  0x1e   : > { %345 = vrot.lane.b32.xlu1 %v3142_v3, %s3031_s8  ;;  %341 = vrot.lane.b32.xlu0 %v298_v4, %s3031_s8  ;;  %v299_v10 = vsel %vm296_vm0, %v297_v8, %v298_v4  ;;  %v3182_v17 = vrot.slane %v3165_v13, 1  ;;  %v306_v18 = vrot.slane %v3168_v14, 1  ;;  %v3189_v20 = vld [vmem:[%s3130_s7 + $0x40] sm:$0xff]  ;;  %v3200_v22 = vrot.slane %v3186_v19, 1  ;;  %v3204_v24 = vld [vmem:[%s3130_s7 + $0x58] sm:$0xff] }
  0x1f   : > { %v3175_v15 = vsel %vm296_vm0, %v300_v11, %v3142_v3  ;;  %v3179_v16 = vsel %vm296_vm0, %v303_v12, %v3159_v9  ;;  %v309_v23 = vrot.slane %v3189_v20, 1  ;;  %v3207_v25 = vld [vmem:[%s3130_s7 + $0x50] sm:$0xff]  ;;  %v3218_v27 = vrot.slane %v3204_v24, 1  ;;  %v3222_v29 = vld [vmem:[%s3130_s7 + $0x68] sm:$0xff]  ;;  %v3225_v30 = vld [vmem:[%s3130_s7 + $0x60] sm:$0xff] }
  0x20   : > { %v3197_v21 = vsel %vm296_vm0, %v306_v18, %v3182_v17  ;;  %v312_v28 = vrot.slane %v3207_v25, 1  ;;  %v3236_v32 = vrot.slane %v3222_v29, 1  ;;  %v315_v33 = vrot.slane %v3225_v30, 1  ;;  %v3240_v34 = vld [vmem:[%s3130_s7 + $0x78] sm:$0xff]  ;;  %v3243_v35 = vld [vmem:[%s3130_s7 + $0x70] sm:$0xff]  ;;  %v3258_v39 = vld [vmem:[%s3130_s7 + $0x88] sm:$0xff] }
  0x21   : > { %v3215_v26 = vsel %vm296_vm0, %v309_v23, %v3200_v22  ;;  %v3254_v37 = vrot.slane %v3240_v34, 1  ;;  %v318_v38 = vrot.slane %v3243_v35, 1  ;;  %v3261_v40 = vld [vmem:[%s3130_s7 + $0x80] sm:$0xff]  ;;  %v3272_v42 = vrot.slane %v3258_v39, 1  ;;  %v3276_v44 = vld [vmem:[%s3130_s7 + $0x98] sm:$0xff]  ;;  %v3279_v45 = vld [vmem:[%s3130_s7 + $0x90] sm:$0xff] }
  0x22   : > { %349 = vrot.lane.b32.xlu1 %v3159_v9, %s3031_s8  ;;  %339 = vrot.lane.b32.xlu0 %v299_v10, %s3031_s8  ;;  %v3233_v31 = vsel %vm296_vm0, %v312_v28, %v3218_v27  ;;  %v3251_v36 = vsel %vm296_vm0, %v315_v33, %v3236_v32  ;;  %4804 = vst [vmem:[#allocation5_spill] sm:$0xff] %v3261_v40  ;;  %v321_v43 = vrot.slane %v3261_v40, 1  ;;  %v3290_v47 = vrot.slane %v3276_v44, 1  ;;  %v3294_v49 = vld [vmem:[%s3130_s7 + $0xa8] sm:$0xff]  ;;  %v3297_v50 = vld [vmem:[%s3130_s7 + $0xa0] sm:$0xff] }
  0x23   : > { %v3269_v41 = vsel %vm296_vm0, %v318_v38, %v3254_v37  ;;  %4805 = vst [vmem:[#allocation6_spill] sm:$0xff] %v3272_v42  ;;  %v324_v48 = vrot.slane %v3279_v45, 1  ;;  %v3308_v52 = vrot.slane %v3294_v49, 1  ;;  %v327_v53 = vrot.slane %v3297_v50, 1  ;;  %v3312_v54 = vld [vmem:[%s3130_s7 + $0xb8] sm:$0xff]  ;;  %v3315_v55 = vld [vmem:[%s3130_s7 + $0xb0] sm:$0xff] }
  0x24   : > { %v3287_v46 = vsel %vm296_vm0, %v321_v43, %v3272_v42  ;;  %v3326_v57 = vrot.slane %v3312_v54, 1  ;;  %v330_v58 = vrot.slane %v3315_v55, 1  ;;  %v261_v59 = vld [vmem:[%s3130_s7 + $0xc8] sm:$0xff]  ;;  %v260_v60 = vld [vmem:[%s3130_s7 + $0xc0] sm:$0xff]  ;;  %v263_v4 = vld [vmem:[%s3130_s7 + $0xd8] sm:$0xff]  ;;  %v425_v23 = vrot.slane %v3136_v1, 2 }
  0x25   : > { %4806 = vst [vmem:[#allocation7_spill] sm:$0xff] %v3287_v46  ;;  %v3305_v51 = vsel %vm296_vm0, %v324_v48, %v3290_v47  ;;  %v3323_v56 = vsel %vm296_vm0, %v327_v53, %v3308_v52  ;;  %v3339_v62 = vrot.slane %v261_v59, 1  ;;  %v333_v63 = vrot.slane %v260_v60, 1  ;;  %v262_v8 = vld [vmem:[%s3130_s7 + $0xd0] sm:$0xff] }
  0x26   : > { %343 = vrot.lane.b32.xlu1 %v3175_v15, %s3031_s8  ;;  %347 = vrot.lane.b32.xlu0 %v3179_v16, %s3031_s8  ;;  %4807 = vst [vmem:[#allocation8_spill] sm:$0xff] %v3326_v57  ;;  %v3337_v61 = vsel %vm296_vm0, %v330_v58, %v3326_v57  ;;  %v3351_v11 = vrot.slane %v263_v4, 1  ;;  %v336_v12 = vrot.slane %v262_v8, 1  ;;  %v424_v28 = vrot.slane %v3146_v5, 2  ;;  %v1792_v8 = vld [vmem:[%s4781_s1] sm:$0xff] }
  0x27   : > { %4808 = vst [vmem:[#allocation9_spill] sm:$0xff] %v3339_v62  ;;  %v3349_v10 = vsel %vm296_vm0, %v333_v63, %v3339_v62  ;;  %v428_v38 = vrot.slane %v3133_v0, 2  ;;  %v427_v43 = vrot.slane %v3149_v6, 2  ;;  %v3374_v53 = vrot.slane %v3139_v2, 2 }
  0x28   : > { %4809 = vst [vmem:[#allocation10_spill] sm:$0xff] %v3349_v10  ;;  %4810 = vst [vmem:[#allocation11_spill] sm:$0xff] %v3351_v11  ;;  %v3359_v18 = vsel %vm296_vm0, %v336_v12, %v3351_v11  ;;  %v426_v33 = vsel %vm423_vm1, %v424_v28, %v425_v23  ;;  %v430_v58 = vrot.slane %v3152_v7, 2  ;;  %v433_v60 = vrot.slane %v3168_v14, 2  ;;  %v1793_v12 = vld [vmem:[%s4781_s1 + $0x8] sm:$0xff] }
  0x29   : > { %4811 = vst [vmem:[#allocation12_spill] sm:$0xff] %v3359_v18  ;;  %v429_v48 = vsel %vm423_vm1, %v427_v43, %v428_v38  ;;  %v3383_v63 = vrot.slane %v3165_v13, 2  ;;  %v3034_v28 = vmov 0.0|0.0   ;;  %v1795_v43 = vld [vmem:[%s4781_s1 + $0x18] sm:$0xff] }
  0x2a   : > { %353 = vrot.lane.b32.xlu1 %v3182_v17, %s3031_s8  ;;  %351 = vrot.lane.b32.xlu0 %v3197_v21, %s3031_s8  ;;  %v432_v59 = vsel %vm423_vm1, %v430_v58, %v3374_v53 }
  0x2b   : > { %v435_v4 = vsel %vm423_vm1, %v433_v60, %v3383_v63  ;;  %2883 = vmatprep.subr.bf16.mxu0 %v3034_v28  ;;  %2889 = vmatprep.subr.bf16.mxu1 %v3034_v28  ;;  %v3478_v60 = vrot.slane %v3186_v19, 2 }
  0x2e   : > { %357 = vrot.lane.b32.xlu1 %v3200_v22, %s3031_s8  ;;  %355 = vrot.lane.b32.xlu0 %v3215_v26, %s3031_s8 }
  0x32   : > { %361 = vrot.lane.b32.xlu1 %v3218_v27, %s3031_s8  ;;  %359 = vrot.lane.b32.xlu0 %v3233_v31, %s3031_s8 }
  0x36   : > { %365 = vrot.lane.b32.xlu1 %v3236_v32, %s3031_s8  ;;  %363 = vrot.lane.b32.xlu0 %v3251_v36, %s3031_s8 }
  0x3a   : > { %369 = vrot.lane.b32.xlu1 %v3254_v37, %s3031_s8  ;;  %367 = vrot.lane.b32.xlu0 %v3269_v41, %s3031_s8 }
  0x3e   : > { %373 = vrot.lane.b32.xlu1 %v3272_v42, %s3031_s8  ;;  %371 = vrot.lane.b32.xlu0 %v3287_v46, %s3031_s8 }
  0x42   : > { %377 = vrot.lane.b32.xlu1 %v3290_v47, %s3031_s8  ;;  %375 = vrot.lane.b32.xlu0 %v3305_v51, %s3031_s8 }
  0x46   : > { %381 = vrot.lane.b32.xlu1 %v3308_v52, %s3031_s8  ;;  %379 = vrot.lane.b32.xlu0 %v3323_v56, %s3031_s8 }
  0x4a   : > { %385 = vrot.lane.b32.xlu1 %v3326_v57, %s3031_s8  ;;  %383 = vrot.lane.b32.xlu0 %v3337_v61, %s3031_s8 }
  0x4e   : > { %389 = vrot.lane.b32.xlu1 %v3339_v62, %s3031_s8  ;;  %387 = vrot.lane.b32.xlu0 %v3349_v10, %s3031_s8  ;;  %v1334_v10 = vlaneseq }
  0x52   : > { %393 = vrot.lane.b32.xlu1 %v3351_v11, %s3031_s8  ;;  %391 = vrot.lane.b32.xlu0 %v3359_v18, %s3031_s8  ;;  %v3546_v11 = vrot.slane %v3204_v24, 2 }
  0x56   : > { %468 = vrot.lane.b32.xlu1 %v425_v23, %s3032_s9  ;;  %466 = vrot.lane.b32.xlu0 %v426_v33, %s3032_s9  ;;  %v2884_v23 = vpack.c.bf16 %v1793_v12, %v1792_v8  ;;  %v1794_v33 = vld [vmem:[%s4781_s1 + $0x10] sm:$0xff] }
  0x57   : > { %v2887_v58 = vpack.c.bf16 %v1795_v43, %v1794_v33 }
  0x58   : > { %2885 = vmatpush3.bf16.msra.mxu0 %v2884_v23  ;;  %2892 = vmatpush3.bf16.msra.mxu1 %v2884_v23 }
  0x59   : > { %2886 = vmatprep.subr.bf16.mxu0 %v3034_v28  ;;  %2890 = vmatprep.subr.bf16.mxu1 %v3034_v28 }
  0x5a   : > { %472 = vrot.lane.b32.xlu1 %v428_v38, %s3032_s9  ;;  %470 = vrot.lane.b32.xlu0 %v429_v48, %s3032_s9 }
  0x5c   : > { %2888 = vmatpush3.bf16.msra.mxu0 %v2887_v58  ;;  %2893 = vmatpush3.bf16.msra.mxu1 %v2887_v58 }
  0x5e   : > { %476 = vrot.lane.b32.xlu1 %v3374_v53, %s3032_s9  ;;  %474 = vrot.lane.b32.xlu0 %v432_v59, %s3032_s9 }
  0x62   : > { %552 = vrot.lane.b32.xlu1 %v3149_v6, %s3033_s10  ;;  %478 = vrot.lane.b32.xlu0 %v435_v4, %s3032_s9 }
  0x66   : > { %726 = vrot.lane.b32.xlu1 %v429_v48, %s3035_s15  ;;  %639 = vrot.lane.b32.xlu0 %v3175_v15, %s3036_s16  ;;  %v4786_v15 = vmov 0.0   ;;  %v1796_v48 = vld [vmem:[%s4781_s1 + $0x20] sm:$0xf] }
  0x67   : > { %2806 = vmatprep.subr.mxu0 %v4786_v15  ;;  %2891 = vmatprep.subr.mxu1 %v4786_v15 }
  0x68   : > { %2807 = vmatpush3.msk.msra.mxu0 %vm2264_vm2, %v1796_v48  ;;  %2808 = vmatprep.mubr.msk.f32.mxu0 %vm3040_vm3, %v4786_v15 }
  0x69   : > { %2894 = vmatpush3.msk.msra.mxu1 %vm2264_vm2, %v1796_v48  ;;  %2847 = vmatprep.mubr.msk.f32.mxu1 %vm3040_vm3, %v4786_v15 }
  0x6a   : > { %899 = vrot.lane.b32.xlu1 %v3179_v16, %s3037_s29  ;;  %812 = vrot.lane.b32.xlu0 %v3152_v7, %s3038_s30 }
  0x6e   : > { %554 = vrot.lane.b32.xlu1 %v3133_v0, %s3033_s10  ;;  %986 = vrot.lane.b32.xlu0 %v432_v59, %s3041_s11 }
  0x72   : > { %556 = vrot.lane.b32.xlu1 %v3152_v7, %s3033_s10  ;;  %641 = vrot.lane.b32.xlu0 %v3142_v3, %s3036_s16 }
  0x76   : > { %643 = vrot.lane.b32.xlu1 %v3179_v16, %s3036_s16  ;;  %728 = vrot.lane.b32.xlu0 %v428_v38, %s3035_s15 }
  0x7a   : > { %730 = vrot.lane.b32.xlu1 %v432_v59, %s3035_s15  ;;  %814 = vrot.lane.b32.xlu0 %v3139_v2, %s3038_s30  ;;  %v436_v59 = vrot.slane %v3189_v20, 2 }
  0x7c   : > { %v438_v12 = vsel %vm423_vm1, %v436_v59, %v3478_v60 }
  0x7e   : > { %816 = vrot.lane.b32.xlu1 %v3168_v14, %s3038_s30  ;;  %901 = vrot.lane.b32.xlu0 %v3159_v9, %s3037_s29 }
  0x82   : > { %558 = vrot.lane.b32.xlu1 %v3139_v2, %s3033_s10  ;;  %988 = vrot.lane.b32.xlu0 %v3374_v53, %s3041_s11 }
  0x86   : > { %645 = vrot.lane.b32.xlu1 %v3159_v9, %s3036_s16  ;;  %903 = vrot.lane.b32.xlu0 %v3197_v21, %s3037_s29 }
  0x8a   : > { %560 = vrot.lane.b32.xlu1 %v3168_v14, %s3033_s10  ;;  %990 = vrot.lane.b32.xlu0 %v435_v4, %s3041_s11 }
  0x8e   : > { %647 = vrot.lane.b32.xlu1 %v3197_v21, %s3036_s16  ;;  %732 = vrot.lane.b32.xlu0 %v3374_v53, %s3035_s15 }
  0x90   : > { %v3453_v3 = vpop.permute.xlu1 %345  ;;  %v3455_v16 = vpop.permute.xlu0 %341 }
  0x92   : > { %734 = vrot.lane.b32.xlu1 %v435_v4, %s3035_s15  ;;  %818 = vrot.lane.b32.xlu0 %v3165_v13, %s3038_s30 }
  0x94   : > { %v3460_v9 = vpop.permute.xlu1 %349  ;;  %v3462_v38 = vpop.permute.xlu0 %339 }
  0x96   : > { %820 = vrot.lane.b32.xlu1 %v3189_v20, %s3038_s30  ;;  %905 = vrot.lane.b32.xlu0 %v3182_v17, %s3037_s29 }
  0x98   : > { %v3468_v21 = vpop.permute.xlu1 %343  ;;  %v3470_v53 = vpop.permute.xlu0 %347 }
  0x9a   : > { %562 = vrot.lane.b32.xlu1 %v3165_v13, %s3033_s10  ;;  %992 = vrot.lane.b32.xlu0 %v3383_v63, %s3041_s11 }
  0x9c   : > { %v3480_v4 = vpop.permute.xlu1 %353  ;;  %v3482_v8 = vpop.permute.xlu0 %351 }
  0x9e   : > { %649 = vrot.lane.b32.xlu1 %v3182_v17, %s3036_s16  ;;  %907 = vrot.lane.b32.xlu0 %v3215_v26, %s3037_s29 }
  0xa0   : > { %v3490_v23 = vpop.permute.xlu1 %357  ;;  %v3492_v28 = vpop.permute.xlu0 %355 }
  0xa1   : > { %4812 = vst [vmem:[#allocation13_spill] sm:$0xff] %v3490_v23  ;;  %4813 = vst [vmem:[#allocation14_spill] sm:$0xff] %v3492_v28  ;;  %v3042_v23 = vmov 1983009808  }
  0xa2   : > { %736 = vrot.lane.b32.xlu1 %v3383_v63, %s3035_s15  ;;  %994 = vrot.lane.b32.xlu0 %v438_v12, %s3041_s11  ;;  %v1332_v62 = vunpack.c.l.s4 %v3042_v23 }
  0xa4   : > { %v3497_v33 = vpop.permute.xlu1 %361  ;;  %v3499_v43 = vpop.permute.xlu0 %359 }
  0xa5   : > { %4814 = vst [vmem:[#allocation15_spill] sm:$0xff] %v3497_v33  ;;  %4815 = vst [vmem:[#allocation16_spill] sm:$0xff] %v3499_v43 }
  0xa6   : > { %564 = vrot.lane.b32.xlu1 %v3189_v20, %s3033_s10  ;;  %822 = vrot.lane.b32.xlu0 %v3186_v19, %s3038_s30 }
  0xa8   : > { %v3505_v17 = vpop.permute.xlu1 %365  ;;  %v3507_v58 = vpop.permute.xlu0 %363 }
  0xa9   : > { %4816 = vst [vmem:[#allocation17_spill] sm:$0xff] %v3505_v17  ;;  %4817 = vst [vmem:[#allocation18_spill] sm:$0xff] %v3507_v58  ;;  %v3530_v17 = vrot.slane %v3240_v34, 2 }
  0xaa   : > { %651 = vrot.lane.b32.xlu1 %v3215_v26, %s3036_s16  ;;  %909 = vrot.lane.b32.xlu0 %v3200_v22, %s3037_s29  ;;  %v445_v26 = vrot.slane %v3243_v35, 2 }
  0xac   : > { %v3513_v48 = vpop.permute.xlu1 %369  ;;  %v3515_v59 = vpop.permute.xlu0 %367 }
  0xad   : > { %4818 = vst [vmem:[#allocation19_spill] sm:$0xff] %v3513_v48  ;;  %4819 = vst [vmem:[#allocation20_spill] sm:$0xff] %v3515_v59 }
  0xae   : > { %738 = vrot.lane.b32.xlu1 %v438_v12, %s3035_s15  ;;  %996 = vrot.lane.b32.xlu0 %v3478_v60, %s3041_s11 }
  0xb0   : > { %v3520_v20 = vpop.permute.xlu1 %373  ;;  %v3522_v15 = vpop.permute.xlu0 %371 }
  0xb1   : > { %4820 = vst [vmem:[#allocation21_spill] sm:$0xff] %v3520_v20  ;;  %4821 = vst [vmem:[#allocation22_spill] sm:$0xff] %v3522_v15  ;;  %v3542_v20 = vsel %vm423_vm1, %v445_v26, %v3530_v17 }
  0xb2   : > { %824 = vrot.lane.b32.xlu1 %v3207_v25, %s3038_s30  ;;  %480 = vrot.lane.b32.xlu0 %v3383_v63, %s3032_s9  ;;  %v439_v63 = vrot.slane %v3207_v25, 2 }
  0xb4   : > { %v3532_v58 = vpop.permute.xlu1 %377  ;;  %v3534_v33 = vpop.permute.xlu0 %375 }
  0xb5   : > { %4822 = vst [vmem:[#allocation23_spill] sm:$0xff] %v3532_v58  ;;  %4823 = vst [vmem:[#allocation24_spill] sm:$0xff] %v3534_v33 }
  0xb6   : > { %911 = vrot.lane.b32.xlu1 %v3233_v31, %s3037_s29  ;;  %566 = vrot.lane.b32.xlu0 %v3186_v19, %s3033_s10  ;;  %v3557_v19 = vsel %vm423_vm1, %v439_v63, %v3546_v11 }
  0xb8   : > { %v3548_v43 = vpop.permute.xlu1 %381  ;;  %v3550_v58 = vpop.permute.xlu0 %379 }
  0xb9   : > { %4824 = vst [vmem:[#allocation25_spill] sm:$0xff] %v3548_v43  ;;  %4825 = vst [vmem:[#allocation26_spill] sm:$0xff] %v3550_v58 }
  0xba   : > { %494 = vrot.lane.b32.xlu1 %v3542_v20, %s3032_s9  ;;  %482 = vrot.lane.b32.xlu0 %v438_v12, %s3032_s9 }
  0xbc   : > { %v3559_v26 = vpop.permute.xlu1 %385  ;;  %v3561_v33 = vpop.permute.xlu0 %383 }
  0xbd   : > { %4826 = vst [vmem:[#allocation27_spill] sm:$0xff] %v3559_v26  ;;  %4827 = vst [vmem:[#allocation28_spill] sm:$0xff] %v3561_v33 }
  0xbe   : > { %998 = vrot.lane.b32.xlu1 %v3557_v19, %s3041_s11  ;;  %653 = vrot.lane.b32.xlu0 %v3200_v22, %s3036_s16 }
  0xc0   : > { %v3567_v43 = vpop.permute.xlu1 %389  ;;  %v3569_v58 = vpop.permute.xlu0 %387 }
  0xc1   : > { %4828 = vst [vmem:[#allocation29_spill] sm:$0xff] %v3567_v43  ;;  %4829 = vst [vmem:[#allocation30_spill] sm:$0xff] %v3569_v58 }
  0xc2   : > { %580 = vrot.lane.b32.xlu1 %v3261_v40, %s3033_s10  ;;  %568 = vrot.lane.b32.xlu0 %v3207_v25, %s3033_s10  ;;  %v448_v25 = vrot.slane %v3261_v40, 2 }
  0xc4   : > { %v3575_v12 = vpop.permute.xlu1 %393  ;;  %v3577_v63 = vpop.permute.xlu0 %391 }
  0xc5   : > { %4830 = vst [vmem:[#allocation31_spill] sm:$0xff] %v3575_v12  ;;  %4831 = vst [vmem:[#allocation32_spill] sm:$0xff] %v3577_v63  ;;  %v3591_v12 = vrot.slane %v3258_v39, 2 }
  0xc6   : > { %496 = vrot.lane.b32.xlu1 %v3530_v17, %s3032_s9  ;;  %740 = vrot.lane.b32.xlu0 %v3478_v60, %s3035_s15 }
  0xc7   : > { %v3603_v26 = vsel %vm423_vm1, %v448_v25, %v3591_v12  ;;  %v1071_v25 = vsel %vm1070_vm5, %v3146_v5, %v3462_v38  ;;  %v1333_v5 = vunpack.c.0.s8 %v1332_v62  ;;  %v1335_v38 = vshrl.u32 %v1334_v10, 7 }
  0xc8   : > { %v3583_v22 = vpop.permute.xlu1 %468  ;;  %v467_v43 = vpop.permute.xlu0 %466  ;;  %4832 = vst [vmem:[#allocation33_spill] sm:$0xff] %v3603_v26 }
  0xc9   : > { %v1100_v15 = vsel %vm1099_vm4, %v1071_v25, %v467_v43 }
  0xca   : > { %667 = vrot.lane.b32.xlu1 %v3287_v46, %s3036_s16  ;;  %655 = vrot.lane.b32.xlu0 %v3233_v31, %s3036_s16 }
  0xcc   : > { %v3593_v63 = vpop.permute.xlu1 %472  ;;  %v3595_v58 = vpop.permute.xlu0 %470 }
  0xce   : > { %582 = vrot.lane.b32.xlu1 %v3258_v39, %s3033_s10  ;;  %826 = vrot.lane.b32.xlu0 %v3204_v24, %s3038_s30 }
  0xd0   : > { %v3605_v31 = vpop.permute.xlu1 %476  ;;  %v3607_v33 = vpop.permute.xlu0 %474 }
  0xd2   : > { %754 = vrot.lane.b32.xlu1 %v3603_v26, %s3035_s15  ;;  %742 = vrot.lane.b32.xlu0 %v3557_v19, %s3035_s15 }
  0xd4   : > { %v553_v18 = vpop.permute.xlu1 %552  ;;  %v3613_v39 = vpop.permute.xlu0 %478 }
  0xd5   : > { %v1129_v57 = vsel %vm1128_vm6, %v1100_v15, %v553_v18 }
  0xd6   : > { %498 = vrot.lane.b32.xlu1 %v3603_v26, %s3032_s9  ;;  %913 = vrot.lane.b32.xlu0 %v3218_v27, %s3037_s29 }
  0xd8   : > { %v727_v48 = vpop.permute.xlu1 %726  ;;  %v640_v46 = vpop.permute.xlu0 %639 }
  0xd9   : > { %v1158_v59 = vsel %vm1157_vm7, %v1129_v57, %v640_v46  ;;  %v3635_v46 = vsub.s32 %v1333_v5, %v1335_v38 }
  0xda   : > { %828 = vrot.lane.b32.xlu1 %v3225_v30, %s3038_s30  ;;  %669 = vrot.lane.b32.xlu0 %v3272_v42, %s3036_s16  ;;  %v1187_v26 = vsel %vm1186_vm8, %v1158_v59, %v727_v48 }
  0xdc   : > { %v900_v23 = vpop.permute.xlu1 %899  ;;  %v813_v43 = vpop.permute.xlu0 %812 }
  0xdd   : > { %v1216_v18 = vsel %vm1215_vm9, %v1187_v26, %v813_v43 }
  0xde   : > { %1000 = vrot.lane.b32.xlu1 %v3546_v11, %s3041_s11  ;;  %840 = vrot.lane.b32.xlu0 %v3279_v45, %s3038_s30  ;;  %v1245_v62 = vsel %vm1244_vm10, %v1216_v18, %v900_v23  ;;  %v442_v23 = vrot.slane %v3225_v30, 2  ;;  %v3651_v18 = vrot.slane %v3222_v29, 2 }
  0xe0   : > { %v555_v57 = vpop.permute.xlu1 %554  ;;  %v987_v10 = vpop.permute.xlu0 %986 }
  0xe1   : > { %v1274_v15 = vsel %vm1273_vm11, %v1245_v62, %v987_v10 }
  0xe2   : > { %v1330_v48 = vcombine.high %v1274_v15, %v1274_v15  ;;  %v1337_v59 = vrot.slane %v1274_v15, %v3635_v46  ;;  %756 = vrot.lane.b32.xlu1 %v3591_v12, %s3035_s15  ;;  %584 = vrot.lane.b32.xlu0 %v3279_v45, %s3033_s10 }
  0xe4   : > { %v1344_v26 = vrot.slane %v1330_v48, %v3635_v46  ;;  %v1345_v25 = vcombine.high %v1337_v59, %v1337_v59  ;;  %v557_v5 = vpop.permute.xlu1 %556  ;;  %v642_v38 = vpop.permute.xlu0 %641 }
  0xe6   : > { %v1346_v43 = vcombine.high %v1344_v26, %v1344_v26  ;;  %v1797_v42 = vcombine.low %v1337_v59, %v1345_v25  ;;  %927 = vrot.lane.b32.xlu1 %v3305_v51, %s3037_s29  ;;  %915 = vrot.lane.b32.xlu0 %v3251_v36, %s3037_s29  ;;  %v3661_v59 = vsel %vm423_vm1, %v442_v23, %v3651_v18  ;;  %v451_v25 = vrot.slane %v3279_v45, 2 }
  0xe8   : > { %v1798_v62 = vcombine.low %v1344_v26, %v1346_v43  ;;  %v644_v10 = vpop.permute.xlu1 %643  ;;  %v729_v15 = vpop.permute.xlu0 %728  ;;  %v1805_v48 = vrot.slane %v1797_v42, %v3635_v46  ;;  %v3665_v26 = vrot.slane %v3276_v44, 2 }
  0xea   : > { %v1812_v28 = vrot.slane %v1798_v62, %v3635_v46  ;;  %671 = vrot.lane.b32.xlu1 %v3305_v51, %s3036_s16  ;;  %484 = vrot.lane.b32.xlu0 %v3478_v60, %s3032_s9  ;;  %v1072_v51 = vsel %vm1070_vm5, %v3136_v1, %v3455_v16  ;;  %v3679_v60 = vsel %vm423_vm1, %v451_v25, %v3665_v26  ;;  %v4833_v1 = vmov 0.0  }
  0xeb   : > { %v1101_v45 = vsel %vm1099_vm4, %v1072_v51, %v3583_v22 }
  0xec   : > { %v731_v43 = vpop.permute.xlu1 %730  ;;  %v815_v40 = vpop.permute.xlu0 %814  ;;  %v1813_v42 = vcombine.low %v1805_v48, %v1812_v28  ;;  %v1130_v28 = vsel %vm1128_vm6, %v1101_v45, %v555_v57 }
  0xed   : > { %v1159_v16 = vsel %vm1157_vm7, %v1130_v28, %v642_v38  ;;  %v1073_v38 = vsel %vm1070_vm5, %v3149_v6, %v3468_v21 }
  0xee   : > { %1002 = vrot.lane.b32.xlu1 %v3661_v59, %s3041_s11  ;;  %842 = vrot.lane.b32.xlu0 %v3276_v44, %s3038_s30  ;;  %v1188_v48 = vsel %vm1186_vm8, %v1159_v16, %v729_v15 }
  0xef   : > { %2809 = vmatmul.mubr.msk.f32.vlgmr.msra.gmra.mrb[0].mxu0 %vm2213_vm12, %v1813_v42  ;;  %v1217_v22 = vsel %vm1215_vm9, %v1188_v48, %v815_v40 }
  0xf0   : > { %v817_v23 = vpop.permute.xlu1 %816  ;;  %v902_v62 = vpop.permute.xlu0 %901  ;;  %2811 = vmatprep.mubr.msk.f32.mxu0 %vm3040_vm3, %v4833_v1 }
  0xf1   : > { %v1246_v25 = vsel %vm1244_vm10, %v1217_v22, %v902_v62 }
  0xf2   : > { %570 = vrot.lane.b32.xlu1 %v3204_v24, %s3033_s10  ;;  %1014 = vrot.lane.b32.xlu0 %v3679_v60, %s3041_s11  ;;  %v1102_v24 = vsel %vm1099_vm4, %v1073_v38, %v3595_v58 }
  0xf3   : > { %v1131_v40 = vsel %vm1128_vm6, %v1102_v24, %v557_v5 }
  0xf4   : > { %v559_v57 = vpop.permute.xlu1 %558  ;;  %v989_v42 = vpop.permute.xlu0 %988  ;;  %v1160_v62 = vsel %vm1157_vm7, %v1131_v40, %v644_v10 }
  0xf5   : > { %v1275_v51 = vsel %vm1273_vm11, %v1246_v25, %v989_v42  ;;  %v1189_v16 = vsel %vm1186_vm8, %v1160_v62, %v731_v43 }
  0xf6   : > { %v1354_v15 = vrot.slane %v1275_v51, %v3635_v46  ;;  %929 = vrot.lane.b32.xlu1 %v3290_v47, %s3037_s29  ;;  %758 = vrot.lane.b32.xlu0 %v3679_v60, %s3035_s15  ;;  %v1347_v6 = vcombine.high %v1275_v51, %v1275_v51  ;;  %v1218_v48 = vsel %vm1215_vm9, %v1189_v16, %v817_v23 }
  0xf8   : > { %v646_v45 = vpop.permute.xlu1 %645  ;;  %v904_v28 = vpop.permute.xlu0 %903  ;;  %v1362_v21 = vcombine.high %v1354_v15, %v1354_v15  ;;  %v1361_v10 = vrot.slane %v1347_v6, %v3635_v46  ;;  %v3737_v6 = vrot.slane %v3294_v49, 2 }
  0xf9   : > { %v1247_v58 = vsel %vm1244_vm10, %v1218_v48, %v904_v28  ;;  %v1074_v28 = vsel %vm1070_vm5, %v3133_v0, %v3453_v3 }
  0xfa   : > { %657 = vrot.lane.b32.xlu1 %v3218_v27, %s3036_s16  ;;  %486 = vrot.lane.b32.xlu0 %v3557_v19, %s3032_s9  ;;  %v1814_v42 = vcombine.low %v1354_v15, %v1362_v21  ;;  %v1103_v16 = vsel %vm1099_vm4, %v1074_v28, %v3593_v63 }
  0xfb   : > { %v1132_v21 = vsel %vm1128_vm6, %v1103_v16, %v559_v57 }
  0xfc   : > { %v561_v22 = vpop.permute.xlu1 %560  ;;  %v991_v5 = vpop.permute.xlu0 %990  ;;  %v1822_v51 = vrot.slane %v1814_v42, %v3635_v46  ;;  %v1161_v48 = vsel %vm1157_vm7, %v1132_v21, %v646_v45 }
  0xfd   : > { %v1276_v25 = vsel %vm1273_vm11, %v1247_v58, %v991_v5 }
  0xfe   : > { %v1370_v43 = vrot.slane %v1276_v25, %v3635_v46  ;;  %1016 = vrot.lane.b32.xlu1 %v3665_v26, %s3041_s11  ;;  %844 = vrot.lane.b32.xlu0 %v3297_v50, %s3038_s30  ;;  %v1363_v62 = vcombine.high %v1276_v25, %v1276_v25 }
 0x100   : > { %v1815_v27 = vcombine.low %v1361_v10, %v1370_v43  ;;  %v648_v19 = vpop.permute.xlu1 %647  ;;  %v733_v23 = vpop.permute.xlu0 %732  ;;  %v1377_v58 = vrot.slane %v1363_v62, %v3635_v46  ;;  %v1378_v5 = vcombine.high %v1370_v43, %v1370_v43  ;;  %v1075_v43 = vsel %vm1070_vm5, %v3152_v7, %v3470_v53 }
 0x101   : > { %v1190_v63 = vsel %vm1186_vm8, %v1161_v48, %v733_v23 }
 0x102   : > { %v1829_v38 = vrot.slane %v1815_v27, %v3635_v46  ;;  %744 = vrot.lane.b32.xlu1 %v3546_v11, %s3035_s15  ;;  %572 = vrot.lane.b32.xlu0 %v3225_v30, %s3033_s10  ;;  %v454_v30 = vrot.slane %v3297_v50, 2  ;;  %v1831_v23 = vcombine.low %v1378_v5, %v1377_v58 }
 0x104   : > { %v735_v15 = vpop.permute.xlu1 %734  ;;  %v819_v24 = vpop.permute.xlu0 %818  ;;  %v1830_v40 = vcombine.low %v1822_v51, %v1829_v38  ;;  %v3752_v25 = vsel %vm423_vm1, %v454_v30, %v3737_v6  ;;  %v1379_v51 = vcombine.high %v1377_v58, %v1377_v58  ;;  %v1104_v38 = vsel %vm1099_vm4, %v1075_v43, %v3607_v33 }
 0x105   : > { %v1219_v57 = vsel %vm1215_vm9, %v1190_v63, %v819_v24  ;;  %v1133_v24 = vsel %vm1128_vm6, %v1104_v38, %v561_v22  ;;  %v1839_v16 = vrot.slane %v1831_v23, %v3635_v46  ;;  %v1076_v43 = vsel %vm1070_vm5, %v3139_v2, %v3460_v9 }
 0x106   : > { %500 = vrot.lane.b32.xlu1 %v3591_v12, %s3032_s9  ;;  %931 = vrot.lane.b32.xlu0 %v3323_v56, %s3037_s29  ;;  %v1162_v62 = vsel %vm1157_vm7, %v1133_v24, %v648_v19 }
 0x107   : > { %2812 = vmatmul.mubr.msk.f32.gmra.mrb[2].mxu0 %vm2213_vm12, %v1830_v40  ;;  %v1191_v30 = vsel %vm1186_vm8, %v1162_v62, %v735_v15 }
 0x108   : > { %v821_v0 = vpop.permute.xlu1 %820  ;;  %v906_v3 = vpop.permute.xlu0 %905  ;;  %2814 = vmatprep.mubr.msk.f32.mxu0 %vm3040_vm3, %v4833_v1 }
 0x109   : > { %v1248_v10 = vsel %vm1244_vm10, %v1219_v57, %v906_v3  ;;  %v1220_v33 = vsel %vm1215_vm9, %v1191_v30, %v821_v0 }
 0x10a   : > { %830 = vrot.lane.b32.xlu1 %v3222_v29, %s3038_s30  ;;  %659 = vrot.lane.b32.xlu0 %v3251_v36, %s3036_s16 }
 0x10c   : > { %v563_v45 = vpop.permute.xlu1 %562  ;;  %v993_v42 = vpop.permute.xlu0 %992 }
 0x10d   : > { %v1277_v27 = vsel %vm1273_vm11, %v1248_v10, %v993_v42 }
 0x10e   : > { %v1387_v36 = vrot.slane %v1277_v27, %v3635_v46  ;;  %586 = vrot.lane.b32.xlu1 %v3276_v44, %s3033_s10  ;;  %1018 = vrot.lane.b32.xlu0 %v3752_v25, %s3041_s11  ;;  %v1380_v40 = vcombine.high %v1277_v27, %v1277_v27 }
 0x110   : > { %v1832_v28 = vcombine.low %v1379_v51, %v1387_v36  ;;  %v650_v7 = vpop.permute.xlu1 %649  ;;  %v908_v53 = vpop.permute.xlu0 %907  ;;  %v1394_v22 = vrot.slane %v1380_v40, %v3635_v46  ;;  %v1395_v21 = vcombine.high %v1387_v36, %v1387_v36 }
 0x111   : > { %v1249_v3 = vsel %vm1244_vm10, %v1220_v33, %v908_v53 }
 0x112   : > { %v1846_v44 = vrot.slane %v1832_v28, %v3635_v46  ;;  %917 = vrot.lane.b32.xlu1 %v3236_v32, %s3037_s29  ;;  %746 = vrot.lane.b32.xlu0 %v3661_v59, %s3035_s15  ;;  %v1848_v0 = vcombine.low %v1395_v21, %v1394_v22 }
 0x114   : > { %v737_v19 = vpop.permute.xlu1 %736  ;;  %v995_v48 = vpop.permute.xlu0 %994  ;;  %v1847_v58 = vcombine.low %v1839_v16, %v1846_v44  ;;  %v1856_v23 = vrot.slane %v1848_v0, %v3635_v46 }
 0x115   : > { %v1278_v15 = vsel %vm1273_vm11, %v1249_v3, %v995_v48 }
 0x116   : > { %v1403_v5 = vrot.slane %v1278_v15, %v3635_v46  ;;  %502 = vrot.lane.b32.xlu1 %v3679_v60, %s3032_s9  ;;  %488 = vrot.lane.b32.xlu0 %v3546_v11, %s3032_s9  ;;  %v1396_v63 = vcombine.high %v1278_v15, %v1278_v15  ;;  %v1105_v11 = vsel %vm1099_vm4, %v1076_v43, %v3605_v31 }
 0x117   : > { %2815 = vmatmul.mubr.msk.f32.gmra.mrb[4].mxu0 %vm2213_vm12, %v1847_v58  ;;  %v1134_v60 = vsel %vm1128_vm6, %v1105_v11, %v563_v45 }
 0x118   : > { %v1411_v57 = vcombine.high %v1403_v5, %v1403_v5  ;;  %v565_v10 = vpop.permute.xlu1 %564  ;;  %v823_v42 = vpop.permute.xlu0 %822  ;;  %2817 = vmatprep.mubr.msk.f32.mxu0 %vm3040_vm3, %v4833_v1  ;;  %v1410_v51 = vrot.slane %v1396_v63, %v3635_v46  ;;  %v1163_v9 = vsel %vm1157_vm7, %v1134_v60, %v650_v7 }
 0x119   : > { %v1192_v24 = vsel %vm1186_vm8, %v1163_v9, %v737_v19 }
 0x11a   : > { %v1849_v27 = vcombine.low %v1403_v5, %v1411_v57  ;;  %832 = vrot.lane.b32.xlu1 %v3243_v35, %s3038_s30  ;;  %673 = vrot.lane.b32.xlu0 %v3290_v47, %s3036_s16  ;;  %v1221_v31 = vsel %vm1215_vm9, %v1192_v24, %v823_v42  ;;  %v1412_v45 = vcombine.high %v1410_v51, %v1410_v51 }
 0x11c   : > { %v1863_v36 = vrot.slane %v1849_v27, %v3635_v46  ;;  %v652_v38 = vpop.permute.xlu1 %651  ;;  %v910_v2 = vpop.permute.xlu0 %909  ;;  %v1865_v62 = vcombine.low %v1410_v51, %v1412_v45 }
 0x11d   : > { %v1250_v40 = vsel %vm1244_vm10, %v1221_v31, %v910_v2 }
 0x11e   : > { %574 = vrot.lane.b32.xlu1 %v3222_v29, %s3033_s10  ;;  %1004 = vrot.lane.b32.xlu0 %v3651_v18, %s3041_s11  ;;  %v1864_v47 = vcombine.low %v1856_v23, %v1863_v36  ;;  %v1873_v22 = vrot.slane %v1865_v62, %v3635_v46 }
 0x120   : > { %v739_v28 = vpop.permute.xlu1 %738  ;;  %2818 = vmatmul.mubr.msk.f32.gmra.mrb[6].mxu0 %vm2213_vm12, %v1864_v47  ;;  %v997_v53 = vpop.permute.xlu0 %996 }
 0x121   : > { %v1279_v7 = vsel %vm1273_vm11, %v1250_v40, %v997_v53  ;;  %2820 = vmatprep.mubr.msk.f32.mxu0 %vm3040_vm3, %v4833_v1 }
 0x122   : > { %v1420_v29 = vrot.slane %v1279_v7, %v3635_v46  ;;  %760 = vrot.lane.b32.xlu1 %v3665_v26, %s3035_s15  ;;  %588 = vrot.lane.b32.xlu0 %v3297_v50, %s3033_s10  ;;  %v1077_v50 = vsel %vm1070_vm5, %v3168_v14, %v3482_v8 }
 0x123   : > { %v1106_v48 = vsel %vm1099_vm4, %v1077_v50, %v3613_v39 }
 0x124   : > { %v1428_v16 = vcombine.high %v1420_v29, %v1420_v29  ;;  %v825_v30 = vpop.permute.xlu1 %824  ;;  %v3817_v44 = vpop.permute.xlu0 %480  ;;  %v1135_v58 = vsel %vm1128_vm6, %v1106_v48, %v565_v10 }
 0x125   : > { %v1164_v14 = vsel %vm1157_vm7, %v1135_v58, %v652_v38 }
 0x126   : > { %v1866_v33 = vcombine.low %v1420_v29, %v1428_v16  ;;  %490 = vrot.lane.b32.xlu1 %v3661_v59, %s3032_s9  ;;  %919 = vrot.lane.b32.xlu0 %v3269_v41, %s3037_s29 }
 0x128   : > { %v1880_v21 = vrot.slane %v1866_v33, %v3635_v46  ;;  %v912_v3 = vpop.permute.xlu1 %911  ;;  %v567_v19 = vpop.permute.xlu0 %566 }
 0x12a   : > { %675 = vrot.lane.b32.xlu1 %v3323_v56, %s3036_s16  ;;  %661 = vrot.lane.b32.xlu0 %v3236_v32, %s3036_s16  ;;  %v1881_v59 = vcombine.low %v1873_v22, %v1880_v21  ;;  %v1193_v56 = vsel %vm1186_vm8, %v1164_v14, %v739_v28  ;;  %v1413_v32 = vcombine.high %v1279_v7, %v1279_v7 }
 0x12b   : > { %v1222_v8 = vsel %vm1215_vm9, %v1193_v56, %v825_v30  ;;  %v1078_v7 = vsel %vm1070_vm5, %v3165_v13, %v3480_v4  ;;  %v457_v4 = vrot.slane %v3315_v55, 2 }
 0x12c   : > { %v3835_v15 = vpop.permute.xlu1 %494  ;;  %2821 = vmatmul.mubr.msk.f32.gmra.mrb[8].mxu0 %vm2213_vm12, %v1881_v59  ;;  %v3838_v5 = vpop.permute.xlu0 %482  ;;  %v1251_v39 = vsel %vm1244_vm10, %v1222_v8, %v912_v3  ;;  %v1427_v10 = vrot.slane %v1413_v32, %v3635_v46 }
 0x12d   : > { %2823 = vmatprep.mubr.msk.f32.mxu0 %vm3040_vm3, %v4833_v1 }
 0x12e   : > { %1006 = vrot.lane.b32.xlu1 %v3542_v20, %s3041_s11  ;;  %846 = vrot.lane.b32.xlu0 %v3294_v49, %s3038_s30 }
 0x130   : > { %v999_v0 = vpop.permute.xlu1 %998  ;;  %v654_v63 = vpop.permute.xlu0 %653 }
 0x131   : > { %v1280_v57 = vsel %vm1273_vm11, %v1251_v39, %v999_v0 }
 0x132   : > { %v1429_v42 = vcombine.high %v1280_v57, %v1280_v57  ;;  %v1436_v43 = vrot.slane %v1280_v57, %v3635_v46  ;;  %748 = vrot.lane.b32.xlu1 %v3651_v18, %s3035_s15  ;;  %576 = vrot.lane.b32.xlu0 %v3243_v35, %s3033_s10  ;;  %v4835_v57 = vld [vmem:[#allocation14_spill] sm:$0xff] }
 0x134   : > { %v1443_v27 = vrot.slane %v1429_v42, %v3635_v46  ;;  %v1444_v11 = vcombine.high %v1436_v43, %v1436_v43  ;;  %v1882_v60 = vcombine.low %v1427_v10, %v1436_v43  ;;  %v3858_v23 = vpop.permute.xlu1 %580  ;;  %v3860_v51 = vpop.permute.xlu0 %568 }
 0x136   : > { %v1883_v36 = vcombine.low %v1444_v11, %v1443_v27  ;;  %933 = vrot.lane.b32.xlu1 %v3308_v52, %s3037_s29  ;;  %762 = vrot.lane.b32.xlu0 %v3752_v25, %s3035_s15  ;;  %v1890_v38 = vrot.slane %v1882_v60, %v3635_v46  ;;  %v1445_v3 = vcombine.high %v1443_v27, %v1443_v27 }
 0x138   : > { %v1897_v2 = vrot.slane %v1883_v36, %v3635_v46  ;;  %v3868_v35 = vpop.permute.xlu1 %496  ;;  %v741_v9 = vpop.permute.xlu0 %740  ;;  %v2948_v36 = vld [vmem:[%s3130_s7 + $0x70] sm:$0xff] }
 0x13a   : > { %663 = vrot.lane.b32.xlu1 %v3269_v41, %s3036_s16  ;;  %504 = vrot.lane.b32.xlu0 %v3665_v26, %s3032_s9  ;;  %v1898_v24 = vcombine.low %v1890_v38, %v1897_v2 }
 0x13c   : > { %v3874_v47 = vpop.permute.xlu1 %667  ;;  %2824 = vmatmul.mubr.msk.f32.gmra.mrb[10].mxu0 %vm2213_vm12, %v1898_v24  ;;  %v656_v31 = vpop.permute.xlu0 %655 }
 0x13d   : > { %2826 = vmatprep.mubr.msk.f32.mxu0 %vm3040_vm3, %v4833_v1 }
 0x13e   : > { %848 = vrot.lane.b32.xlu1 %v3315_v55, %s3038_s30  ;;  %834 = vrot.lane.b32.xlu0 %v3240_v34, %s3038_s30 }
 0x140   : > { %v3883_v45 = vpop.permute.xlu1 %582  ;;  %v827_v41 = vpop.permute.xlu0 %826 }
 0x142   : > { %590 = vrot.lane.b32.xlu1 %v3294_v49, %s3033_s10  ;;  %1020 = vrot.lane.b32.xlu0 %v3737_v6, %s3041_s11  ;;  %v1107_v49 = vsel %vm1099_vm4, %v1078_v7, %v3817_v44 }
 0x143   : > { %v1136_v29 = vsel %vm1128_vm6, %v1107_v49, %v567_v19 }
 0x144   : > { %v3889_v26 = vpop.permute.xlu1 %754  ;;  %v743_v40 = vpop.permute.xlu0 %742  ;;  %v1165_v16 = vsel %vm1157_vm7, %v1136_v29, %v654_v63  ;;  %v2947_v63 = vld [vmem:[%s3130_s7 + $0x40] sm:$0xff]  ;;  %v3982_v29 = vld [vmem:[%s3130_s7 + $0xb8] sm:$0xff] }
 0x145   : > { %v1194_v30 = vsel %vm1186_vm8, %v1165_v16, %v741_v9  ;;  %v1079_v10 = vsel %vm1070_vm5, %v2947_v63, %v4835_v57 }
 0x146   : > { %921 = vrot.lane.b32.xlu1 %v3254_v37, %s3037_s29  ;;  %750 = vrot.lane.b32.xlu0 %v3542_v20, %s3035_s15  ;;  %v1223_v13 = vsel %vm1215_vm9, %v1194_v30, %v827_v41  ;;  %v1108_v42 = vsel %vm1099_vm4, %v1079_v10, %v3838_v5 }
 0x147   : > { %v1137_v43 = vsel %vm1128_vm6, %v1108_v42, %v3860_v51  ;;  %v4837_v51 = vld [vmem:[#allocation7_spill] sm:$0xff] }
 0x148   : > { %v3895_v28 = vpop.permute.xlu1 %498  ;;  %v914_v53 = vpop.permute.xlu0 %913  ;;  %v1166_v60 = vsel %vm1157_vm7, %v1137_v43, %v656_v31  ;;  %v4028_v43 = vld [vmem:[%s3130_s7 + $0x88] sm:$0xff] }
 0x149   : > { %v1252_v44 = vsel %vm1244_vm10, %v1223_v13, %v914_v53  ;;  %v1195_v5 = vsel %vm1186_vm8, %v1166_v60, %v743_v40 }
 0x14a   : > { %492 = vrot.lane.b32.xlu1 %v3651_v18, %s3032_s9  ;;  %935 = vrot.lane.b32.xlu0 %v3337_v61, %s3037_s29  ;;  %v3918_v18 = vrot.slane %v3312_v54, 2 }
 0x14c   : > { %v829_v62 = vpop.permute.xlu1 %828  ;;  %v3907_v20 = vpop.permute.xlu0 %669  ;;  %v3929_v54 = vsel %vm423_vm1, %v457_v4, %v3918_v18 }
 0x14d   : > { %v1224_v9 = vsel %vm1215_vm9, %v1195_v5, %v829_v62  ;;  %v4044_v5 = vld [vmem:[%s3130_s7 + $0xc0] sm:$0xff] }
 0x14e   : > { %677 = vrot.lane.b32.xlu1 %v3308_v52, %s3036_s16  ;;  %506 = vrot.lane.b32.xlu0 %v3752_v25, %s3032_s9  ;;  %v4834_v25 = vld [vmem:[#allocation5_spill] sm:$0xff] }
 0x150   : > { %v1001_v33 = vpop.permute.xlu1 %1000  ;;  %v841_v22 = vpop.permute.xlu0 %840 }
 0x151   : > { %v1281_v21 = vsel %vm1273_vm11, %v1252_v44, %v1001_v33 }
 0x152   : > { %v1446_v19 = vcombine.high %v1281_v21, %v1281_v21  ;;  %v1453_v52 = vrot.slane %v1281_v21, %v3635_v46  ;;  %1008 = vrot.lane.b32.xlu1 %v3530_v17, %s3041_s11  ;;  %836 = vrot.lane.b32.xlu0 %v4834_v25, %s3038_s30 }
 0x154   : > { %v1460_v50 = vrot.slane %v1446_v19, %v3635_v46  ;;  %v1461_v59 = vcombine.high %v1453_v52, %v1453_v52  ;;  %v1899_v48 = vcombine.low %v1445_v3, %v1453_v52  ;;  %v3932_v58 = vpop.permute.xlu1 %756  ;;  %v3934_v14 = vpop.permute.xlu0 %584 }
 0x156   : > { %v1900_v56 = vcombine.low %v1461_v59, %v1460_v50  ;;  %578 = vrot.lane.b32.xlu1 %v3240_v34, %s3033_s10  ;;  %1022 = vrot.lane.b32.xlu0 %v3929_v54, %s3041_s11  ;;  %v1907_v32 = vrot.slane %v1899_v48, %v3635_v46  ;;  %v2950_v50 = vld [vmem:[%s3130_s7 + $0x78] sm:$0xff] }
 0x157   : > { %v4839_v59 = vld [vmem:[#allocation19_spill] sm:$0xff] }
 0x158   : > { %v1914_v8 = vrot.slane %v1900_v56, %v3635_v46  ;;  %v928_v39 = vpop.permute.xlu1 %927  ;;  %v916_v0 = vpop.permute.xlu0 %915  ;;  %v1086_v48 = vsel %vm1070_vm5, %v2950_v50, %v4839_v59 }
 0x159   : > { %v1253_v31 = vsel %vm1244_vm10, %v1224_v9, %v916_v0 }
 0x15a   : > { %764 = vrot.lane.b32.xlu1 %v3737_v6, %s3035_s15  ;;  %592 = vrot.lane.b32.xlu0 %v3315_v55, %s3033_s10  ;;  %v1915_v34 = vcombine.low %v1907_v32, %v1914_v8  ;;  %v4836_v55 = vld [vmem:[#allocation20_spill] sm:$0xff] }
 0x15b   : > { %v1085_v38 = vsel %vm1070_vm5, %v2948_v36, %v4836_v55  ;;  %v4840_v8 = vld [vmem:[#allocation8_spill] sm:$0xff] }
 0x15c   : > { %v3953_v27 = vpop.permute.xlu1 %671  ;;  %2827 = vmatmul.mubr.msk.f32.gmra.mrb[12].mxu0 %vm2213_vm12, %v1915_v34  ;;  %v3956_v11 = vpop.permute.xlu0 %484  ;;  %v1114_v2 = vsel %vm1099_vm4, %v1085_v38, %v3835_v15 }
 0x15d   : > { %2829 = vmatprep.mubr.msk.f32.mxu0 %vm3040_vm3, %v4833_v1  ;;  %v1143_v24 = vsel %vm1128_vm6, %v1114_v2, %v3858_v23 }
 0x15e   : > { %665 = vrot.lane.b32.xlu1 %v3254_v37, %s3036_s16  ;;  %923 = vrot.lane.b32.xlu0 %v4837_v51, %s3037_s29  ;;  %v1172_v40 = vsel %vm1157_vm7, %v1143_v24, %v3874_v47 }
 0x15f   : > { %v1201_v7 = vsel %vm1186_vm8, %v1172_v40, %v3889_v26  ;;  %v4059_v40 = vld [vmem:[%s3130_s7 + $0xc8] sm:$0xff] }
 0x160   : > { %v1003_v41 = vpop.permute.xlu1 %1002  ;;  %v843_v53 = vpop.permute.xlu0 %842  ;;  %v1230_v23 = vsel %vm1215_vm9, %v1201_v7, %v841_v22 }
 0x161   : > { %v1282_v37 = vsel %vm1273_vm11, %v1253_v31, %v1003_v41  ;;  %v1259_v47 = vsel %vm1244_vm10, %v1230_v23, %v928_v39  ;;  %v1115_v39 = vsel %vm1099_vm4, %v1086_v48, %v3868_v35  ;;  %v4841_v41 = vld [vmem:[#allocation6_spill] sm:$0xff] }
 0x162   : > { %v1462_v49 = vcombine.high %v1282_v37, %v1282_v37  ;;  %v1469_v15 = vrot.slane %v1282_v37, %v3635_v46  ;;  %850 = vrot.lane.b32.xlu1 %v3982_v29, %s3038_s30  ;;  %679 = vrot.lane.b32.xlu0 %v3337_v61, %s3036_s16  ;;  %v4838_v61 = vld [vmem:[#allocation33_spill] sm:$0xff]  ;;  %v1144_v0 = vsel %vm1128_vm6, %v1115_v39, %v3883_v45  ;;  %v4062_v37 = vrot.slane %v4059_v40, 2 }
 0x163   : > { %v1173_v34 = vsel %vm1157_vm7, %v1144_v0, %v3907_v20 }
 0x164   : > { %v1476_v62 = vrot.slane %v1462_v49, %v3635_v46  ;;  %v1477_v16 = vcombine.high %v1469_v15, %v1469_v15  ;;  %v3991_v26 = vpop.permute.xlu1 %570  ;;  %v1015_v30 = vpop.permute.xlu0 %1014  ;;  %v1202_v42 = vsel %vm1186_vm8, %v1173_v34, %v3932_v58 }
 0x165   : > { %v1288_v13 = vsel %vm1273_vm11, %v1259_v47, %v1015_v30  ;;  %v1231_v35 = vsel %vm1215_vm9, %v1202_v42, %v843_v53  ;;  %v460_v53 = vrot.slane %v4044_v5, 2  ;;  %v2954_v47 = vld [vmem:[%s3130_s7 + $0x80] sm:$0xff] }
 0x166   : > { %v1478_v4 = vcombine.high %v1476_v62, %v1476_v62  ;;  %v1916_v44 = vcombine.low %v1469_v15, %v1477_v16  ;;  %v1561_v33 = vcombine.high %v1288_v13, %v1288_v13  ;;  %v3995_v21 = vrot.slane %v1288_v13, %v3635_v46  ;;  %752 = vrot.lane.b32.xlu1 %v3530_v17, %s3035_s15 }
 0x167   : > { %1010 = vrot.lane.b32.xlu0 %v4838_v61, %s3041_s11 }
 0x168   : > { %v1917_v22 = vcombine.low %v1476_v62, %v1478_v4  ;;  %v1575_v3 = vrot.slane %v1561_v33, %v3635_v46  ;;  %v1576_v19 = vcombine.high %v3995_v21, %v3995_v21  ;;  %v930_v52 = vpop.permute.xlu1 %929  ;;  %v759_v25 = vpop.permute.xlu0 %758  ;;  %v1924_v56 = vrot.slane %v1916_v44, %v3635_v46  ;;  %v4842_v62 = vld [vmem:[#allocation22_spill] sm:$0xff] }
 0x169   : > { %v1260_v45 = vsel %vm1244_vm10, %v1231_v35, %v930_v52  ;;  %v1087_v16 = vsel %vm1070_vm5, %v2954_v47, %v4842_v62  ;;  %v4843_v4 = vld [vmem:[#allocation10_spill] sm:$0xff]  ;;  %v4079_v44 = vsel %vm423_vm1, %v460_v53, %v4062_v37  ;;  %v4844_v35 = vld [vmem:[#allocation9_spill] sm:$0xff]  ;;  %v4164_v62 = vld [vmem:[%s3130_s7 + $0xd8] sm:$0xff] }
 0x16a   : > { %v1931_v17 = vrot.slane %v1917_v22, %v3635_v46  ;;  %v4009_v32 = vcombine.low %v1576_v19, %v1575_v3  ;;  %937 = vrot.lane.b32.xlu1 %v4840_v8, %s3037_s29  ;;  %v1577_v36 = vcombine.high %v1575_v3, %v1575_v3  ;;  %v1116_v13 = vsel %vm1099_vm4, %v1087_v16, %v3895_v28 }
 0x16b   : > { %766 = vrot.lane.b32.xlu0 %v3929_v54, %s3035_s15  ;;  %v1145_v33 = vsel %vm1128_vm6, %v1116_v13, %v3934_v14  ;;  %v4167_v16 = vrot.slane %v4164_v62, 2  ;;  %v4847_v13 = vld [vmem:[#allocation16_spill] sm:$0xff] }
 0x16c   : > { %v4019_v63 = vpop.permute.xlu1 %657  ;;  %v4021_v57 = vpop.permute.xlu0 %486  ;;  %v1932_v10 = vcombine.low %v1924_v56, %v1931_v17  ;;  %v1174_v3 = vsel %vm1157_vm7, %v1145_v33, %v3953_v27 }
 0x16d   : > { %v1203_v28 = vsel %vm1186_vm8, %v1174_v3, %v759_v25 }
 0x16e   : > { %838 = vrot.lane.b32.xlu1 %v4028_v43, %s3038_s30  ;;  %2830 = vmatmul.mubr.msk.f32.gmra.mrb[14].mxu0 %vm2213_vm12, %v1932_v10 }
 0x16f   : > { %508 = vrot.lane.b32.xlu0 %v3737_v6, %s3032_s9  ;;  %2832 = vmatprep.mubr.msk.f32.mxu0 %vm3040_vm3, %v4833_v1 }
 0x170   : > { %v1017_v20 = vpop.permute.xlu1 %1016  ;;  %v845_v60 = vpop.permute.xlu0 %844 }
 0x171   : > { %v1289_v58 = vsel %vm1273_vm11, %v1260_v45, %v1017_v20  ;;  %v1232_v19 = vsel %vm1215_vm9, %v1203_v28, %v845_v60 }
 0x172   : > { %v1578_v55 = vcombine.high %v1289_v58, %v1289_v58  ;;  %v1585_v38 = vrot.slane %v1289_v58, %v3635_v46  ;;  %1024 = vrot.lane.b32.xlu1 %v3918_v18, %s3041_s11  ;;  %v2955_v58 = vld [vmem:[%s3130_s7 + $0x48] sm:$0xff] }
 0x173   : > { %852 = vrot.lane.b32.xlu0 %v4044_v5, %s3038_s30 }
 0x174   : > { %v1592_v6 = vrot.slane %v1578_v55, %v3635_v46  ;;  %v1593_v51 = vcombine.high %v1585_v38, %v1585_v38  ;;  %v2018_v2 = vcombine.low %v1577_v36, %v1585_v38  ;;  %v4049_v9 = vpop.permute.xlu1 %744  ;;  %v4051_v24 = vpop.permute.xlu0 %572  ;;  %v4845_v36 = vld [vmem:[#allocation13_spill] sm:$0xff] }
 0x175   : > { %v1080_v55 = vsel %vm1070_vm5, %v2955_v58, %v4845_v36 }
 0x176   : > { %v2019_v31 = vcombine.low %v1593_v51, %v1592_v6  ;;  %925 = vrot.lane.b32.xlu1 %v4841_v41, %s3037_s29  ;;  %v2026_v7 = vrot.slane %v2018_v2, %v3635_v46  ;;  %v1109_v51 = vsel %vm1099_vm4, %v1080_v55, %v3956_v11 }
 0x177   : > { %594 = vrot.lane.b32.xlu0 %v3982_v29, %s3033_s10  ;;  %v1138_v2 = vsel %vm1128_vm6, %v1109_v51, %v3991_v26 }
 0x178   : > { %v2033_v49 = vrot.slane %v2019_v31, %v3635_v46  ;;  %v4066_v15 = vpop.permute.xlu1 %500  ;;  %v932_v23 = vpop.permute.xlu0 %931  ;;  %v4139_v31 = vld [vmem:[%s3130_s7 + $0xd0] sm:$0xff]  ;;  %v1167_v41 = vsel %vm1157_vm7, %v1138_v2, %v4019_v63 }
 0x179   : > { %v1261_v14 = vsel %vm1244_vm10, %v1232_v19, %v932_v23  ;;  %v1196_v53 = vsel %vm1186_vm8, %v1167_v41, %v4049_v9  ;;  %v4846_v23 = vld [vmem:[#allocation12_spill] sm:$0xff]  ;;  %v463_v9 = vrot.slane %v4139_v31, 2  ;;  %v4848_v2 = vld [vmem:[#allocation11_spill] sm:$0xff] }
 0x17a   : > { %681 = vrot.lane.b32.xlu1 %v4840_v8, %s3036_s16  ;;  %v2034_v30 = vcombine.low %v2026_v7, %v2033_v49 }
 0x17b   : > { %939 = vrot.lane.b32.xlu0 %v4843_v4, %s3037_s29 }
 0x17c   : > { %v831_v61 = vpop.permute.xlu1 %830  ;;  %2848 = vmatmul.mubr.msk.f32.vlgmr.msra.gmra.mrb[0].mxu1 %vm2213_vm12, %v2034_v30  ;;  %v4084_v22 = vpop.permute.xlu0 %659  ;;  %v2958_v30 = vld [vmem:[%s3130_s7 + $0x50] sm:$0xff] }
 0x17d   : > { %2850 = vmatprep.mubr.msk.f32.mxu1 %vm3040_vm3, %v4833_v1  ;;  %v1225_v26 = vsel %vm1215_vm9, %v1196_v53, %v831_v61 }
 0x17e   : > { %1026 = vrot.lane.b32.xlu1 %v4079_v44, %s3041_s11 }
 0x17f   : > { %1012 = vrot.lane.b32.xlu0 %v3591_v12, %s3041_s11 }
 0x180   : > { %v4097_v52 = vpop.permute.xlu1 %586  ;;  %v1019_v50 = vpop.permute.xlu0 %1018 }
 0x181   : > { %v1290_v27 = vsel %vm1273_vm11, %v1261_v14, %v1019_v50  ;;  %v465_v14 = vsel %vm423_vm1, %v463_v9, %v4167_v16 }
 0x182   : > { %v1594_v59 = vcombine.high %v1290_v27, %v1290_v27  ;;  %v1601_v48 = vrot.slane %v1290_v27, %v3635_v46  ;;  %510 = vrot.lane.b32.xlu1 %v3929_v54, %s3032_s9 }
 0x183   : > { %768 = vrot.lane.b32.xlu0 %v3918_v18, %s3035_s15 }
 0x184   : > { %v1608_v25 = vrot.slane %v1594_v59, %v3635_v46  ;;  %v1609_v56 = vcombine.high %v1601_v48, %v1601_v48  ;;  %v918_v12 = vpop.permute.xlu1 %917  ;;  %v747_v17 = vpop.permute.xlu0 %746 }
 0x185   : > { %v1254_v49 = vsel %vm1244_vm10, %v1225_v26, %v918_v12 }
 0x186   : > { %v1610_v8 = vcombine.high %v1608_v25, %v1608_v25  ;;  %v2035_v39 = vcombine.low %v1601_v48, %v1609_v56  ;;  %596 = vrot.lane.b32.xlu1 %v4044_v5, %s3033_s10 }
 0x187   : > { %854 = vrot.lane.b32.xlu0 %v4059_v40, %s3038_s30 }
 0x188   : > { %v2036_v0 = vcombine.low %v1608_v25, %v1610_v8  ;;  %v4110_v10 = vpop.permute.xlu1 %502  ;;  %v4112_v54 = vpop.permute.xlu0 %488  ;;  %v2043_v34 = vrot.slane %v2035_v39, %v3635_v46 }
 0x18a   : > { %v2050_v42 = vrot.slane %v2036_v0, %v3635_v46  ;;  %683 = vrot.lane.b32.xlu1 %v4843_v4, %s3036_s16  ;;  %v1081_v4 = vsel %vm1070_vm5, %v2958_v30, %v4847_v13  ;;  %v4849_v13 = vld [vmem:[#allocation21_spill] sm:$0xff] }
 0x18b   : > { %941 = vrot.lane.b32.xlu0 %v4844_v35, %s3037_s29  ;;  %v1110_v61 = vsel %vm1099_vm4, %v1081_v4, %v4021_v57  ;;  %v1088_v4 = vsel %vm1070_vm5, %v4028_v43, %v4849_v13 }
 0x18c   : > { %v833_v45 = vpop.permute.xlu1 %832  ;;  %v4120_v20 = vpop.permute.xlu0 %673  ;;  %v2051_v60 = vcombine.low %v2043_v34, %v2050_v42  ;;  %v1139_v3 = vsel %vm1128_vm6, %v1110_v61, %v4051_v24  ;;  %v264_v34 = vld [vmem:[%s3130_s7 + $0xe0] sm:$0xff]  ;;  %v4214_v42 = vld [vmem:[%s3130_s7 + $0xe8] sm:$0xff] }
 0x18d   : > { %v1168_v50 = vsel %vm1157_vm7, %v1139_v3, %v4084_v22  ;;  %v4222_v58 = vrot.slane %v4214_v42, 1  ;;  %v723_v51 = vrot.slane %v264_v34, 2  ;;  %v4233_v53 = vrot.slane %v4214_v42, 2 }
 0x18e   : > { %770 = vrot.lane.b32.xlu1 %v4079_v44, %s3035_s15  ;;  %2851 = vmatmul.mubr.msk.f32.gmra.mrb[2].mxu1 %vm2213_vm12, %v2051_v60  ;;  %v1197_v27 = vsel %vm1186_vm8, %v1168_v50, %v747_v17  ;;  %v636_v60 = vrot.slane %v264_v34, 1 }
 0x18f   : > { %1028 = vrot.lane.b32.xlu0 %v4062_v37, %s3041_s11  ;;  %2853 = vmatprep.mubr.msk.f32.mxu1 %vm3040_vm3, %v4833_v1  ;;  %v1226_v24 = vsel %vm1215_vm9, %v1197_v27, %v833_v45 }
 0x190   : > { %v4132_v38 = vpop.permute.xlu1 %574  ;;  %v1005_v6 = vpop.permute.xlu0 %1004  ;;  %v638_v41 = vsel %vm296_vm0, %v636_v60, %v4222_v58 }
 0x191   : > { %v1283_v47 = vsel %vm1273_vm11, %v1254_v49, %v1005_v6 }
 0x192   : > { %856 = vrot.lane.b32.xlu1 %v4139_v31, %s3038_s30  ;;  %v1486_v33 = vrot.slane %v1283_v47, %v3635_v46  ;;  %v1479_v59 = vcombine.high %v1283_v47, %v1283_v47 }
 0x193   : > { %512 = vrot.lane.b32.xlu0 %v3918_v18, %s3032_s9 }
 0x194   : > { %v4149_v11 = vpop.permute.xlu1 %760  ;;  %v4151_v7 = vpop.permute.xlu0 %588  ;;  %v1494_v57 = vcombine.high %v1486_v33, %v1486_v33  ;;  %v1493_v22 = vrot.slane %v1479_v59, %v3635_v46  ;;  %v2959_v59 = vld [vmem:[%s3130_s7 + $0x58] sm:$0xff] }
 0x196   : > { %943 = vrot.lane.b32.xlu1 %v4846_v23, %s3037_s29  ;;  %v1933_v12 = vcombine.low %v1486_v33, %v1494_v57  ;;  %v4850_v57 = vld [vmem:[#allocation15_spill] sm:$0xff] }
 0x197   : > { %598 = vrot.lane.b32.xlu0 %v4059_v40, %s3033_s10 }
 0x198   : > { %v4160_v18 = vpop.permute.xlu1 %490  ;;  %v920_v63 = vpop.permute.xlu0 %919 }
 0x19a   : > { %685 = vrot.lane.b32.xlu1 %v4844_v35, %s3036_s16  ;;  %v1941_v35 = vrot.slane %v1933_v12, %v3635_v46  ;;  %v2960_v12 = vld [vmem:[%s3130_s7 + $0x90] sm:$0xff] }
 0x19b   : > { %514 = vrot.lane.b32.xlu0 %v4079_v44, %s3032_s9  ;;  %v1255_v44 = vsel %vm1244_vm10, %v1226_v24, %v920_v63 }
 0x19c   : > { %v4181_v28 = vpop.permute.xlu1 %675  ;;  %v4183_v19 = vpop.permute.xlu0 %661 }
 0x19e   : > { %600 = vrot.lane.b32.xlu1 %v4139_v31, %s3033_s10 }
 0x19f   : > { %1030 = vrot.lane.b32.xlu0 %v465_v14, %s3041_s11 }
 0x1a0   : > { %v1007_v48 = vpop.permute.xlu1 %1006  ;;  %v847_v25 = vpop.permute.xlu0 %846 }
 0x1a1   : > { %v4196_v56 = vsel %vm1273_vm11, %v1255_v44, %v1007_v48 }
 0x1a2   : > { %v4201_v17 = vrot.slane %v4196_v56, %v3635_v46  ;;  %687 = vrot.lane.b32.xlu1 %v4846_v23, %s3036_s16  ;;  %v725_v23 = vsel %vm423_vm1, %v723_v51, %v4233_v53 }
 0x1a3   : > { %772 = vrot.lane.b32.xlu0 %v4062_v37, %s3035_s15 }
 0x1a4   : > { %v1934_v8 = vcombine.low %v1493_v22, %v4201_v17  ;;  %v4208_v39 = vpop.permute.xlu1 %748  ;;  %v4210_v0 = vpop.permute.xlu0 %576  ;;  %v1510_v60 = vcombine.high %v4201_v17, %v4201_v17 }
 0x1a6   : > { %v1948_v45 = vrot.slane %v1934_v8, %v3635_v46  ;;  %774 = vrot.lane.b32.xlu1 %v465_v14, %s3035_s15  ;;  %v4851_v8 = vld [vmem:[#allocation24_spill] sm:$0xff] }
 0x1a7   : > { %858 = vrot.lane.b32.xlu0 %v4164_v62, %s3038_s30 }
 0x1a8   : > { %v934_v36 = vpop.permute.xlu1 %933  ;;  %v4224_v55 = vpop.permute.xlu0 %762  ;;  %v1949_v6 = vcombine.low %v1941_v35, %v1948_v45 }
 0x1aa   : > { %860 = vrot.lane.b32.xlu1 %v264_v34, %s3038_s30  ;;  %2833 = vmatmul.mubr.msk.f32.gmra.mrb[16].mxu0 %vm2213_vm12, %v1949_v6 }
 0x1ab   : > { %945 = vrot.lane.b32.xlu0 %v4848_v2, %s3037_s29  ;;  %2835 = vmatprep.mubr.msk.f32.mxu0 %vm3040_vm3, %v4833_v1 }
 0x1ac   : > { %v4237_v26 = vpop.permute.xlu1 %663  ;;  %v4239_v49 = vpop.permute.xlu0 %504 }
 0x1ae   : > { %947 = vrot.lane.b32.xlu1 %v638_v41, %s3037_s29 }
 0x1af   : > { %1032 = vrot.lane.b32.xlu0 %v4167_v16, %s3041_s11 }
 0x1b0   : > { %v4246_v47 = vpop.permute.xlu1 %848  ;;  %v835_v63 = vpop.permute.xlu0 %834 }
 0x1b2   : > { %1034 = vrot.lane.b32.xlu1 %v725_v23, %s3041_s11 }
 0x1b3   : > { %516 = vrot.lane.b32.xlu0 %v4062_v37, %s3032_s9  ;;  %v1117_v37 = vsel %vm1099_vm4, %v1088_v4, %v4066_v15  ;;  %v1495_v15 = vcombine.high %v4196_v56, %v4196_v56 }
 0x1b4   : > { %v4251_v9 = vpop.permute.xlu1 %590  ;;  %v1021_v30 = vpop.permute.xlu0 %1020  ;;  %v1146_v3 = vsel %vm1128_vm6, %v1117_v37, %v4097_v52 }
 0x1b5   : > { %v1509_v22 = vrot.slane %v1495_v15, %v3635_v46 }
 0x1b6   : > { %518 = vrot.lane.b32.xlu1 %v465_v14, %s3032_s9  ;;  %v1175_v14 = vsel %vm1157_vm7, %v1146_v3, %v4120_v20  ;;  %v1082_v20 = vsel %vm1070_vm5, %v2959_v59, %v4850_v57 }
 0x1b7   : > { %602 = vrot.lane.b32.xlu0 %v4164_v62, %s3033_s10  ;;  %v1204_v43 = vsel %vm1186_vm8, %v1175_v14, %v4149_v11  ;;  %v1111_v11 = vsel %vm1099_vm4, %v1082_v20, %v4112_v54 }
 0x1b8   : > { %v922_v33 = vpop.permute.xlu1 %921  ;;  %v4259_v61 = vpop.permute.xlu0 %750  ;;  %v1233_v52 = vsel %vm1215_vm9, %v1204_v43, %v847_v25  ;;  %v1140_v48 = vsel %vm1128_vm6, %v1111_v11, %v4132_v38  ;;  %v1089_v38 = vsel %vm1070_vm5, %v2960_v12, %v4851_v8 }
 0x1b9   : > { %v1262_v24 = vsel %vm1244_vm10, %v1233_v52, %v934_v36  ;;  %v1169_v54 = vsel %vm1157_vm7, %v1140_v48, %v4183_v19  ;;  %v1118_v19 = vsel %vm1099_vm4, %v1089_v38, %v4110_v10  ;;  %v266_v10 = vld [vmem:[%s3130_s7 + $0xf0] sm:$0xff] }
 0x1ba   : > { %604 = vrot.lane.b32.xlu1 %v264_v34, %s3033_s10  ;;  %v1291_v44 = vsel %vm1273_vm11, %v1262_v24, %v1021_v30  ;;  %v1198_v34 = vsel %vm1186_vm8, %v1169_v54, %v4208_v39  ;;  %v1147_v39 = vsel %vm1128_vm6, %v1118_v19, %v4151_v7  ;;  %v1511_v30 = vcombine.high %v1509_v22, %v1509_v22 }
 0x1bb   : > { %689 = vrot.lane.b32.xlu0 %v4848_v2, %s3036_s16  ;;  %v1618_v35 = vrot.slane %v1291_v44, %v3635_v46  ;;  %v1227_v36 = vsel %vm1215_vm9, %v1198_v34, %v835_v63  ;;  %v1176_v17 = vsel %vm1157_vm7, %v1147_v39, %v4181_v28  ;;  %v1611_v4 = vcombine.high %v1291_v44, %v1291_v44 }
 0x1bc   : > { %v4272_v50 = vpop.permute.xlu1 %492  ;;  %v936_v27 = vpop.permute.xlu0 %935  ;;  %v1256_v51 = vsel %vm1244_vm10, %v1227_v36, %v922_v33  ;;  %v1205_v13 = vsel %vm1186_vm8, %v1176_v17, %v4224_v55  ;;  %v1950_v33 = vcombine.low %v1510_v60, %v1509_v22  ;;  %v896_v28 = vrot.slane %v266_v10, 1  ;;  %v2961_v36 = vld [vmem:[%s3130_s7 + $0x60] sm:$0xff] }
 0x1bd   : > { %v1626_v37 = vcombine.high %v1618_v35, %v1618_v35  ;;  %v1234_v3 = vsel %vm1215_vm9, %v1205_v13, %v4246_v47  ;;  %v983_v24 = vrot.slane %v266_v10, 2 }
 0x1be   : > { %691 = vrot.lane.b32.xlu1 %v638_v41, %s3036_s16  ;;  %v1263_v55 = vsel %vm1244_vm10, %v1234_v3, %v936_v27  ;;  %v1958_v27 = vrot.slane %v1950_v33, %v3635_v46 }
 0x1bf   : > { %776 = vrot.lane.b32.xlu0 %v4167_v16, %s3035_s15  ;;  %v2052_v57 = vcombine.low %v1618_v35, %v1626_v37 }
 0x1c0   : > { %v4290_v25 = vpop.permute.xlu1 %677  ;;  %v4292_v56 = vpop.permute.xlu0 %506 }
 0x1c1   : > { %v2060_v8 = vrot.slane %v2052_v57, %v3635_v46 }
 0x1c2   : > { %v4308_v45 = vpop.f32.mrb[0].mxu0  ;;  %778 = vrot.lane.b32.xlu1 %v725_v23, %s3035_s15  ;;  %v4326_v23 = vld [vmem:[%s3130_s7 + $0xf8] sm:$0xff] }
 0x1c3   : > { %2458 = vst.msk [vmem:[%s4297_s14] sm:$0xff] %vm1099_vm4, %v4308_v45  ;;  %v2810_v6 = vpop.f32.mrb[1].mxu0  ;;  %862 = vrot.lane.b32.xlu0 %v4214_v42, %s3038_s30  ;;  %v897_v14 = vrot.slane %v4326_v23, 1  ;;  %v984_v44 = vrot.slane %v4326_v23, 2 }
 0x1c4   : > { %v1009_v2 = vpop.permute.xlu1 %1008  ;;  %v837_v41 = vpop.permute.xlu0 %836  ;;  %v4852_v6 = vld [vmem:[#allocation18_spill] sm:$0xff] }
 0x1c5   : > { %v1285_v63 = vsel %vm1273_vm11, %v1256_v51, %v1009_v2  ;;  %v898_v11 = vsel %vm296_vm0, %v896_v28, %v897_v14  ;;  %v985_v34 = vsel %vm423_vm1, %v983_v24, %v984_v44  ;;  %v1083_v39 = vsel %vm1070_vm5, %v2961_v36, %v4852_v6 }
 0x1c6   : > { %v4334_v7 = vrot.slane %v1285_v63, %v3635_v46  ;;  %520 = vrot.lane.b32.xlu1 %v4167_v16, %s3032_s9  ;;  %v1625_v16 = vrot.slane %v1611_v4, %v3635_v46  ;;  %v1512_v17 = vcombine.high %v1285_v63, %v1285_v63 }
 0x1c7   : > { %949 = vrot.lane.b32.xlu0 %v4222_v58, %s3037_s29 }
 0x1c8   : > { %v1951_v43 = vcombine.low %v1511_v30, %v4334_v7  ;;  %v4345_v15 = vpop.permute.xlu1 %578  ;;  %v1023_v52 = vpop.permute.xlu0 %1022  ;;  %v1526_v63 = vrot.slane %v1512_v17, %v3635_v46 }
 0x1c9   : > { %v4348_v59 = vsel %vm1273_vm11, %v1263_v55, %v1023_v52 }
 0x1ca   : > { %v1965_v47 = vrot.slane %v1951_v43, %v3635_v46  ;;  %v4354_v20 = vrot.slane %v4348_v59, %v3635_v46  ;;  %1036 = vrot.lane.b32.xlu1 %v4233_v53, %s3041_s11 }
 0x1cb   : > { %864 = vrot.lane.b32.xlu0 %v266_v10, %s3038_s30 }
 0x1cc   : > { %v2053_v48 = vcombine.low %v1625_v16, %v4354_v20  ;;  %v4363_v54 = vpop.permute.xlu1 %764  ;;  %v4365_v22 = vpop.permute.xlu0 %592  ;;  %v1966_v12 = vcombine.low %v1958_v27, %v1965_v47  ;;  %v2962_v47 = vld [vmem:[%s3130_s7 + $0x98] sm:$0xff]  ;;  %v1642_v36 = vcombine.high %v4354_v20, %v4354_v20 }
 0x1cd   : > { %v4853_v27 = vld [vmem:[#allocation23_spill] sm:$0xff] }
 0x1ce   : > { %v2067_v38 = vrot.slane %v2053_v48, %v3635_v46  ;;  %951 = vrot.lane.b32.xlu1 %v898_v11, %s3037_s29  ;;  %2836 = vmatmul.mubr.msk.f32.gmra.mrb[18].mxu0 %vm2213_vm12, %v1966_v12  ;;  %v1090_v24 = vsel %vm1070_vm5, %v2962_v47, %v4853_v27  ;;  %v1627_v11 = vcombine.high %v4348_v59, %v4348_v59 }
 0x1cf   : > { %606 = vrot.lane.b32.xlu0 %v4214_v42, %s3033_s10  ;;  %2838 = vmatprep.mubr.msk.f32.mxu0 %vm3040_vm3, %v4833_v1  ;;  %v1112_v42 = vsel %vm1099_vm4, %v1083_v39, %v4160_v18  ;;  %s2764_s10 = sshll.u32 %s3095_s2, 5 }
 0x1d0   : > { %v4374_v35 = vpop.permute.xlu1 %665  ;;  %v924_v19 = vpop.permute.xlu0 %923  ;;  %v2068_v60 = vcombine.low %v2060_v8, %v2067_v38  ;;  %v1141_v10 = vsel %vm1128_vm6, %v1112_v42, %v4210_v0  ;;  %v2539_v0 = vmul.f32 %v4308_v45, %v4308_v45  ;;  %v1641_v59 = vrot.slane %v1627_v11, %v3635_v46  ;;  %s4738_s23 = scalar_lea.hbm %s4785_s5, %s2764_s10 }
 0x1d1   : > { %v1170_v30 = vsel %vm1157_vm7, %v1141_v10, %v4237_v26  ;;  %v1527_v26 = vcombine.high %v4334_v7, %v4334_v7 }
 0x1d2   : > { %1038 = vrot.lane.b32.xlu1 %v985_v34, %s3041_s11  ;;  %2854 = vmatmul.mubr.msk.f32.gmra.mrb[4].mxu1 %vm2213_vm12, %v2068_v60  ;;  %v2564_v43 = vsel %vm1099_vm4, %v2539_v0, 0.0  ;;  %v2069_v17 = vcombine.low %v1642_v36, %v1641_v59  ;;  %v2963_v0 = vld [vmem:[%s3130_s7 + $0x68] sm:$0xff] }
 0x1d3   : > { %693 = vrot.lane.b32.xlu0 %v4222_v58, %s3036_s16  ;;  %2856 = vmatprep.mubr.msk.f32.mxu1 %vm3040_vm3, %v4833_v1  ;;  %v1199_v58 = vsel %vm1186_vm8, %v1170_v30, %v4259_v61  ;;  %v1967_v52 = vcombine.low %v1527_v26, %v1526_v63  ;;  %v1643_v30 = vcombine.high %v1641_v59, %v1641_v59  ;;  %v4854_v63 = vld [vmem:[#allocation17_spill] sm:$0xff] }
 0x1d4   : > { %v851_v51 = vpop.permute.xlu1 %850  ;;  %v4389_v2 = vpop.permute.xlu0 %679  ;;  %v1228_v18 = vsel %vm1215_vm9, %v1199_v58, %v837_v41  ;;  %v1084_v26 = vsel %vm1070_vm5, %v2963_v0, %v4854_v63 }
 0x1d5   : > { %v1975_v34 = vrot.slane %v1967_v52, %v3635_v46 }
 0x1d6   : > { %866 = vrot.lane.b32.xlu1 %v4326_v23, %s3038_s30  ;;  %v1257_v23 = vsel %vm1244_vm10, %v1228_v18, %v924_v19 }
 0x1d7   : > { %780 = vrot.lane.b32.xlu0 %v4233_v53, %s3035_s15  ;;  %v2484_v53 = vsel %vm1099_vm4, %v4308_v45, 0.0 }
 0x1d8   : > { %v4402_v13 = vpop.permute.xlu1 %752 }
 0x1d9   : > { %v1011_v4 = vpop.permute.xlu0 %1010 }
 0x1da   : > { %v4411_v61 = vsel %vm1273_vm11, %v1257_v23, %v1011_v4  ;;  %v2339_v37 = vpop.f32.mrb[2].mxu0  ;;  %1040 = vrot.lane.b32.xlu1 %v984_v44, %s3041_s11  ;;  %v2964_v23 = vld [vmem:[%s3130_s7 + $0xa0] sm:$0xff]  ;;  %v4855_v4 = vld [vmem:[#allocation26_spill] sm:$0xff] }
 0x1db   : > { %v1535_v41 = vrot.slane %v4411_v61, %v3635_v46  ;;  %2459 = vst.msk [vmem:[%s4297_s14 + $0x8] sm:$0xff] %vm1099_vm4, %v2339_v37  ;;  %v2485_v7 = vsel %vm1099_vm4, %v2339_v37, 0.0  ;;  %v2540_v33 = vmul.f32 %v2339_v37, %v2339_v37  ;;  %v2813_v3 = vpop.f32.mrb[3].mxu0  ;;  %953 = vrot.lane.b32.xlu0 %v897_v14, %s3037_s29  ;;  %v1119_v14 = vsel %vm1099_vm4, %v1090_v24, %v4239_v49  ;;  %s3043_s29 = smov [#allocation2]  }
 0x1dc   : > { %v2486_v28 = vadd.f32 %v2485_v7, %v2484_v53  ;;  %v938_v55 = vpop.permute.xlu1 %937  ;;  %v1148_v12 = vsel %vm1128_vm6, %v1119_v14, %v4251_v9  ;;  %v1528_v58 = vcombine.high %v4411_v61, %v4411_v61  ;;  %v1091_v37 = vsel %vm1070_vm5, %v2964_v23, %v4855_v4  ;;  %s2971_s30 = sshll.u32 %s3043_s29, 4  ;;  %s2972_s30 = int_to_ptr.vmem [resolvable:$false] %s2971_s30 }
 0x1dd   : > { %v1543_v16 = vcombine.high %v1535_v41, %v1535_v41  ;;  %v2565_v57 = vsel %vm1099_vm4, %v2540_v33, 0.0  ;;  %v767_v45 = vpop.permute.xlu0 %766  ;;  %v1177_v38 = vsel %vm1157_vm7, %v1148_v12, %v4290_v25  ;;  %v2077_v53 = vrot.slane %v2069_v17, %v3635_v46  ;;  %s2973_s6 = scalar_lea.vmem %s2972_s30, 64 }
 0x1de   : > { %v2566_v44 = vadd.f32 %v2565_v57, %v2564_v43  ;;  %v1206_v49 = vsel %vm1186_vm8, %v1177_v38, %v4363_v54  ;;  %v1113_v33 = vsel %vm1099_vm4, %v1084_v26, %v4272_v50  ;;  %v1120_v61 = vsel %vm1099_vm4, %v1091_v37, %v4292_v56 }
 0x1df   : > { %v1968_v48 = vcombine.low %v1535_v41, %v1543_v16  ;;  %v1235_v9 = vsel %vm1215_vm9, %v1206_v49, %v851_v51  ;;  %v1149_v52 = vsel %vm1128_vm6, %v1120_v61, %v4365_v22  ;;  %v1142_v50 = vsel %vm1128_vm6, %v1113_v33, %v4345_v15 }
 0x1e0   : > { %v839_v8 = vpop.permute.xlu1 %838  ;;  %v1264_v25 = vsel %vm1244_vm10, %v1235_v9, %v938_v55  ;;  %v1178_v56 = vsel %vm1157_vm7, %v1149_v52, %v4389_v2  ;;  %v1542_v24 = vrot.slane %v1528_v58, %v3635_v46 }
 0x1e1   : > { %v1982_v19 = vrot.slane %v1968_v48, %v3635_v46  ;;  %v4437_v60 = vpop.permute.xlu0 %508  ;;  %v1171_v48 = vsel %vm1157_vm7, %v1142_v50, %v4374_v35  ;;  %v1207_v22 = vsel %vm1186_vm8, %v1178_v56, %v767_v45 }
 0x1e2   : > { %v1200_v12 = vsel %vm1186_vm8, %v1171_v48, %v4402_v13 }
 0x1e3   : > { %v1983_v6 = vcombine.low %v1975_v34, %v1982_v19  ;;  %v1229_v2 = vsel %vm1215_vm9, %v1200_v12, %v839_v8 }
 0x1e4   : > { %v1025_v39 = vpop.permute.xlu1 %1024 }
 0x1e5   : > { %v1293_v42 = vsel %vm1273_vm11, %v1264_v25, %v1025_v39  ;;  %2839 = vmatmul.mubr.msk.f32.gmra.mrb[20].mxu0 %vm2213_vm12, %v1983_v6  ;;  %v853_v10 = vpop.permute.xlu0 %852 }
 0x1e6   : > { %v1651_v20 = vrot.slane %v1293_v42, %v3635_v46  ;;  %2841 = vmatprep.mubr.msk.f32.mxu0 %vm3040_vm3, %v4833_v1  ;;  %v1644_v16 = vcombine.high %v1293_v42, %v1293_v42  ;;  %v1236_v15 = vsel %vm1215_vm9, %v1207_v22, %v853_v10 }
 0x1e8   : > { %v2070_v54 = vcombine.low %v1643_v30, %v1651_v20  ;;  %v926_v51 = vpop.permute.xlu1 %925  ;;  %v1658_v38 = vrot.slane %v1644_v16, %v3635_v46  ;;  %v1659_v34 = vcombine.high %v1651_v20, %v1651_v20 }
 0x1e9   : > { %v4453_v18 = vpop.permute.xlu0 %594  ;;  %v1258_v19 = vsel %vm1244_vm10, %v1229_v2, %v926_v51 }
 0x1ea   : > { %v2084_v41 = vrot.slane %v2070_v54, %v3635_v46  ;;  %v2344_v7 = vpop.f32.mrb[4].mxu0  ;;  %v2086_v25 = vcombine.low %v1659_v34, %v1658_v38 }
 0x1eb   : > { %2460 = vst.msk [vmem:[%s4297_s14 + $0x10] sm:$0xff] %vm1099_vm4, %v2344_v7  ;;  %v2487_v3 = vsel %vm1099_vm4, %v2344_v7, 0.0  ;;  %v2541_v55 = vmul.f32 %v2344_v7, %v2344_v7  ;;  %v2816_v43 = vpop.f32.mrb[5].mxu0 }
 0x1ec   : > { %v2488_v57 = vadd.f32 %v2487_v3, %v2486_v28  ;;  %v4472_v47 = vpop.permute.xlu1 %681  ;;  %v2085_v27 = vcombine.low %v2077_v53, %v2084_v41  ;;  %v2016_v53 = vrot.slane %v4009_v32, %v3635_v46  ;;  %v2094_v41 = vrot.slane %v2086_v25, %v3635_v46 }
 0x1ed   : > { %v2567_v11 = vsel %vm1099_vm4, %v2541_v55, 0.0  ;;  %v940_v14 = vpop.permute.xlu0 %939 }
 0x1ee   : > { %v2568_v28 = vadd.f32 %v2567_v11, %v2566_v44  ;;  %2857 = vmatmul.mubr.msk.f32.gmra.mrb[6].mxu1 %vm2213_vm12, %v2085_v27  ;;  %v1265_v35 = vsel %vm1244_vm10, %v1236_v15, %v940_v14  ;;  %v1544_v44 = vcombine.high %v1542_v24, %v1542_v24 }
 0x1ef   : > { %2859 = vmatprep.mubr.msk.f32.mxu1 %vm3040_vm3, %v4833_v1 }
 0x1f0   : > { %v1027_v45 = vpop.permute.xlu1 %1026  ;;  %v1984_v20 = vcombine.low %v1542_v24, %v1544_v44 }
 0x1f1   : > { %v1294_v59 = vsel %vm1273_vm11, %v1265_v35, %v1027_v45  ;;  %v1013_v13 = vpop.permute.xlu0 %1012 }
 0x1f2   : > { %v1667_v36 = vrot.slane %v1294_v59, %v3635_v46  ;;  %v1287_v49 = vsel %vm1273_vm11, %v1258_v19, %v1013_v13  ;;  %v1992_v61 = vrot.slane %v1984_v20, %v3635_v46  ;;  %v1660_v3 = vcombine.high %v1294_v59, %v1294_v59  ;;  %v4857_v20 = vld [vmem:[#allocation28_spill] sm:$0xff] }
 0x1f3   : > { %v1545_v9 = vcombine.high %v1287_v49, %v1287_v49  ;;  %v1552_v8 = vrot.slane %v1287_v49, %v3635_v46  ;;  %v2349_v6 = vpop.f32.mrb[6].mxu0 }
 0x1f4   : > { %v1675_v39 = vcombine.high %v1667_v36, %v1667_v36  ;;  %2461 = vst.msk [vmem:[%s4297_s14 + $0x18] sm:$0xff] %vm1099_vm4, %v2349_v6  ;;  %v2489_v42 = vsel %vm1099_vm4, %v2349_v6, 0.0  ;;  %v2542_v10 = vmul.f32 %v2349_v6, %v2349_v6  ;;  %v4500_v17 = vpop.permute.xlu1 %510  ;;  %v2819_v30 = vpop.f32.mrb[7].mxu0  ;;  %v1674_v14 = vrot.slane %v1660_v3, %v3635_v46 }
 0x1f5   : > { %v1559_v54 = vrot.slane %v1545_v9, %v3635_v46  ;;  %v1560_v51 = vcombine.high %v1552_v8, %v1552_v8  ;;  %v2490_v58 = vadd.f32 %v2489_v42, %v2488_v57  ;;  %v769_v0 = vpop.permute.xlu0 %768  ;;  %v2965_v57 = vld [vmem:[%s3130_s7 + $0xa8] sm:$0xff]  ;;  %v2966_v30 = vld [vmem:[%s3130_s7 + $0xb0] sm:$0xff]  ;;  %s223_s7 = sand.u32 1, %s3021_s19  }
 0x1f6   : > { %v2087_v63 = vcombine.low %v1667_v36, %v1675_v39  ;;  %v2569_v26 = vsel %vm1099_vm4, %v2542_v10, 0.0  ;;  %v1676_v34 = vcombine.high %v1674_v14, %v1674_v14  ;;  %s2733_s9 = sshll.u32 %s223_s7, 1  ;;  %s2629_s24 = scalar_lea.sflag [#allocation3], %s223_s7 }
 0x1f7   : > { %v1985_v23 = vcombine.low %v1552_v8, %v1560_v51  ;;  %v2001_v4 = vcombine.low %v1559_v54, %v3995_v21  ;;  %v2570_v37 = vadd.f32 %v2569_v26, %v2568_v28  ;;  %v4856_v21 = vld [vmem:[#allocation25_spill] sm:$0xff]  ;;  %v1093_v54 = vsel %vm1070_vm5, %v2966_v30, %v4857_v20  ;;  %s225_s15 = scalar_lea.vmem [#allocation2], %s2733_s9 }
 0x1f8   : > { %v2101_v7 = vrot.slane %v2087_v63, %v3635_v46  ;;  %v597_v33 = vpop.permute.xlu1 %596  ;;  %v1092_v27 = vsel %vm1070_vm5, %v2965_v57, %v4856_v21  ;;  %v2103_v49 = vcombine.low %v1674_v14, %v1676_v34  ;;  %s2645_s16 = sshll.u32 %s225_s15, 4  ;;  %s4740_s16 = int_to_ptr.vmem [resolvable:$true] %s2645_s16 }
 0x1f9   : > { %v1999_v55 = vrot.slane %v1985_v23, %v3635_v46  ;;  %v2009_v43 = vrot.slane %v2001_v4, %v3635_v46  ;;  %v855_v52 = vpop.permute.xlu0 %854  ;;  %v1121_v56 = vsel %vm1099_vm4, %v1092_v27, %v4437_v60  ;;  %s2967_s2 = scalar_lea.vmem %s4740_s16, 32  ;;  %p2974_p0 = scmp.lt.s32.totalorder %s4740_s16, %s2972_s30 }
 0x1fa   : > { %v2102_v16 = vcombine.low %v2094_v41, %v2101_v7  ;;  %v1150_v11 = vsel %vm1128_vm6, %v1121_v56, %v4453_v18  ;;  %v2111_v39 = vrot.slane %v2103_v49, %v3635_v46  ;;  %p2968_p11 = scmp.ne.s32.totalorder %s4740_s16, %s2967_s2  ;;  %p2975_p1 = scmp.lt.s32.totalorder %s2973_s6, %s2967_s2 }
 0x1fb   : > { %v2000_v32 = vcombine.low %v1992_v61, %v1999_v55  ;;  %v2017_v50 = vcombine.low %v2009_v43, %v2016_v53  ;;  %v1179_v22 = vsel %vm1157_vm7, %v1150_v11, %v4472_v47 }
 0x1fc   : > { %v684_v24 = vpop.permute.xlu1 %683  ;;  %2860 = vmatmul.mubr.msk.f32.gmra.mrb[8].mxu1 %vm2213_vm12, %v2102_v16  ;;  %v1208_v60 = vsel %vm1186_vm8, %v1179_v22, %v769_v0  ;;  %p2969_p12 = pnand %p2968_p11, %p3112_p5  ;;  %p2976_p2 = por %p2975_p1, %p2974_p0 }
 0x1fd   : > { %2842 = vmatmul.mubr.msk.f32.gmra.mrb[22].mxu0 %vm2213_vm12, %v2000_v32  ;;  %v942_v48 = vpop.permute.xlu0 %941  ;;  %2862 = vmatprep.mubr.msk.f32.mxu1 %vm3040_vm3, %v4833_v1  ;;  %v1237_v12 = vsel %vm1215_vm9, %v1208_v60, %v855_v52 }
 0x1fe   : > { %2844 = vmatprep.mubr.msk.f32.mxu0 %vm3040_vm3, %v4833_v1  ;;  %v1266_v35 = vsel %vm1244_vm10, %v1237_v12, %v942_v48  ;;  %p2970_p13 = pneg %p2969_p12 }
 0x1ff   : > { %v2354_v28 = vpop.f32.mrb[8].mxu0 }
 0x200   : > { %2462 = vst.msk [vmem:[%s4297_s14 + $0x20] sm:$0xff] %vm1099_vm4, %v2354_v28  ;;  %v2491_v18 = vsel %vm1099_vm4, %v2354_v28, 0.0  ;;  %v2543_v15 = vmul.f32 %v2354_v28, %v2354_v28  ;;  %v771_v2 = vpop.permute.xlu1 %770  ;;  %v2822_v38 = vpop.f32.mrb[9].mxu0  ;;  %p2977_p3 = pnand %p2976_p2, %p2970_p13 }
 0x201   : > { %v2492_v45 = vadd.f32 %v2491_v18, %v2490_v58  ;;  %2845 = vmatmul.mubr.msk.f32.gmra.mrb[24].mxu0 %vm2213_vm12, %v2017_v50  ;;  %v1029_v47 = vpop.permute.xlu0 %1028  ;;  %v1122_v58 = vsel %vm1099_vm4, %v1093_v54, %v4500_v17  ;;  %v4858_v18 = vld [vmem:[#allocation27_spill] sm:$0xff] }
 0x202   : > { %v2571_v44 = vsel %vm1099_vm4, %v2543_v15, 0.0  ;;  %v1295_v19 = vsel %vm1273_vm11, %v1266_v35, %v1029_v47  ;;  %v1151_v63 = vsel %vm1128_vm6, %v1122_v58, %v597_v33  ;;  %v1094_v15 = vsel %vm1070_vm5, %v3982_v29, %v4858_v18  ;;  %v4859_v47 = vld [vmem:[#allocation30_spill] sm:$0xff] }
 0x203   : > { %v2572_v59 = vadd.f32 %v2571_v44, %v2570_v37  ;;  %v1684_v13 = vrot.slane %v1295_v19, %v3635_v46  ;;  %v1180_v23 = vsel %vm1157_vm7, %v1151_v63, %v684_v24  ;;  %v1677_v37 = vcombine.high %v1295_v19, %v1295_v19 }
 0x204   : > { %v857_v36 = vpop.permute.xlu1 %856  ;;  %v1209_v4 = vsel %vm1186_vm8, %v1180_v23, %v771_v2  ;;  %v1095_v44 = vsel %vm1070_vm5, %v4044_v5, %v4859_v47 }
 0x205   : > { %v1692_v9 = vcombine.high %v1684_v13, %v1684_v13  ;;  %v513_v8 = vpop.permute.xlu0 %512  ;;  %v1238_v41 = vsel %vm1215_vm9, %v1209_v4, %v857_v36  ;;  %v1691_v57 = vrot.slane %v1677_v37, %v3635_v46 }
 0x206   : > { %v1123_v38 = vsel %vm1099_vm4, %v1094_v15, %v513_v8 }
 0x207   : > { %v2104_v6 = vcombine.low %v1684_v13, %v1692_v9 }
 0x208   : > { %v944_v25 = vpop.permute.xlu1 %943 }
 0x209   : > { %v2118_v42 = vrot.slane %v2104_v6, %v3635_v46  ;;  %v599_v10 = vpop.permute.xlu0 %598  ;;  %v1267_v3 = vsel %vm1244_vm10, %v1238_v41, %v944_v25 }
 0x20a   : > { %v1152_v35 = vsel %vm1128_vm6, %v1123_v38, %v599_v10  ;;  %v4860_v38 = vld [vmem:[#allocation29_spill] sm:$0xff] }
 0x20b   : > { %v2119_v51 = vcombine.low %v2111_v39, %v2118_v42 }
 0x20c   : > { %v686_v0 = vpop.permute.xlu1 %685 }
 0x20d   : > { %2863 = vmatmul.mubr.msk.f32.gmra.mrb[10].mxu1 %vm2213_vm12, %v2119_v51  ;;  %v515_v26 = vpop.permute.xlu0 %514  ;;  %v1181_v19 = vsel %vm1157_vm7, %v1152_v35, %v686_v0 }
 0x20e   : > { %2865 = vmatprep.mubr.msk.f32.mxu1 %vm3040_vm3, %v4833_v1  ;;  %v1124_v29 = vsel %vm1099_vm4, %v1095_v44, %v515_v26 }
 0x20f   : > { %v2359_v53 = vpop.f32.mrb[10].mxu0 }
 0x210   : > { %2463 = vst.msk [vmem:[%s4297_s14 + $0x28] sm:$0xff] %vm1099_vm4, %v2359_v53  ;;  %v2493_v17 = vsel %vm1099_vm4, %v2359_v53, 0.0  ;;  %v2544_v7 = vmul.f32 %v2359_v53, %v2359_v53  ;;  %v601_v33 = vpop.permute.xlu1 %600  ;;  %v2825_v61 = vpop.f32.mrb[11].mxu0 }
 0x211   : > { %v4556_v55 = vadd.f32 %v2493_v17, %v2492_v45  ;;  %v1031_v43 = vpop.permute.xlu0 %1030  ;;  %v1153_v13 = vsel %vm1128_vm6, %v1124_v29, %v601_v33 }
 0x212   : > { %v2573_v52 = vsel %vm1099_vm4, %v2544_v7, 0.0  ;;  %v1296_v16 = vsel %vm1273_vm11, %v1267_v3, %v1031_v43 }
 0x213   : > { %v4561_v21 = vadd.f32 %v2573_v52, %v2572_v59  ;;  %v1693_v27 = vcombine.high %v1296_v16, %v1296_v16  ;;  %v1700_v32 = vrot.slane %v1296_v16, %v3635_v46 }
 0x214   : > { %v688_v50 = vpop.permute.xlu1 %687 }
 0x215   : > { %v1707_v56 = vrot.slane %v1693_v27, %v3635_v46  ;;  %v1708_v24 = vcombine.high %v1700_v32, %v1700_v32  ;;  %v2120_v11 = vcombine.low %v1691_v57, %v1700_v32  ;;  %v773_v14 = vpop.permute.xlu0 %772  ;;  %v1182_v9 = vsel %vm1157_vm7, %v1153_v13, %v688_v50  ;;  %v4861_v13 = vld [vmem:[#allocation32_spill] sm:$0xff] }
 0x216   : > { %v1210_v59 = vsel %vm1186_vm8, %v1181_v19, %v773_v14 }
 0x217   : > { %v2121_v48 = vcombine.low %v1708_v24, %v1707_v56  ;;  %v2128_v60 = vrot.slane %v2120_v11, %v3635_v46  ;;  %v1709_v42 = vcombine.high %v1707_v56, %v1707_v56 }
 0x218   : > { %v775_v22 = vpop.permute.xlu1 %774 }
 0x219   : > { %v2135_v28 = vrot.slane %v2121_v48, %v3635_v46  ;;  %v859_v12 = vpop.permute.xlu0 %858  ;;  %v1211_v5 = vsel %vm1186_vm8, %v1182_v9, %v775_v22 }
 0x21a   : > { %v1239_v36 = vsel %vm1215_vm9, %v1210_v59, %v859_v12 }
 0x21b   : > { %v2136_v2 = vcombine.low %v2128_v60, %v2135_v28 }
 0x21c   : > { %v861_v34 = vpop.permute.xlu1 %860 }
 0x21d   : > { %2866 = vmatmul.mubr.msk.f32.gmra.mrb[12].mxu1 %vm2213_vm12, %v2136_v2  ;;  %v946_v45 = vpop.permute.xlu0 %945  ;;  %v1240_v39 = vsel %vm1215_vm9, %v1211_v5, %v861_v34  ;;  %v1096_v34 = vsel %vm1070_vm5, %v4059_v40, %v4860_v38  ;;  %v1097_v40 = vsel %vm1070_vm5, %v4139_v31, %v4861_v13 }
 0x21e   : > { %2868 = vmatprep.mubr.msk.f32.mxu1 %vm3040_vm3, %v4833_v1  ;;  %v1268_v8 = vsel %vm1244_vm10, %v1239_v36, %v946_v45 }
 0x220   : > { %v948_v49 = vpop.permute.xlu1 %947 }
 0x221   : > { %v1033_v6 = vpop.permute.xlu0 %1032  ;;  %v1269_v20 = vsel %vm1244_vm10, %v1240_v39, %v948_v49 }
 0x222   : > { %v1297_v25 = vsel %vm1273_vm11, %v1268_v8, %v1033_v6 }
 0x223   : > { %v1710_v10 = vcombine.high %v1297_v25, %v1297_v25  ;;  %v1717_v30 = vrot.slane %v1297_v25, %v3635_v46 }
 0x224   : > { %v1035_v54 = vpop.permute.xlu1 %1034 }
 0x225   : > { %v1724_v51 = vrot.slane %v1710_v10, %v3635_v46  ;;  %v1725_v58 = vcombine.high %v1717_v30, %v1717_v30  ;;  %v2137_v0 = vcombine.low %v1709_v42, %v1717_v30  ;;  %v1298_v63 = vsel %vm1273_vm11, %v1269_v20, %v1035_v54  ;;  %v517_v26 = vpop.permute.xlu0 %516 }
 0x226   : > { %v1726_v23 = vcombine.high %v1298_v63, %v1298_v63  ;;  %v1733_v4 = vrot.slane %v1298_v63, %v3635_v46  ;;  %v1125_v35 = vsel %vm1099_vm4, %v1096_v34, %v517_v26 }
 0x227   : > { %v2138_v37 = vcombine.low %v1725_v58, %v1724_v51  ;;  %v2145_v7 = vrot.slane %v2137_v0, %v3635_v46 }
 0x228   : > { %v1740_v53 = vrot.slane %v1726_v23, %v3635_v46  ;;  %v1741_v41 = vcombine.high %v1733_v4, %v1733_v4  ;;  %v519_v17 = vpop.permute.xlu1 %518 }
 0x229   : > { %v2152_v33 = vrot.slane %v2138_v37, %v3635_v46  ;;  %v603_v61 = vpop.permute.xlu0 %602  ;;  %v1126_v9 = vsel %vm1099_vm4, %v1097_v40, %v519_v17 }
 0x22a   : > { %v1742_v3 = vcombine.high %v1740_v53, %v1740_v53  ;;  %v2154_v43 = vcombine.low %v1733_v4, %v1741_v41  ;;  %v4862_v41 = vld [vmem:[#allocation31_spill] sm:$0xff] }
 0x22b   : > { %v2153_v52 = vcombine.low %v2145_v7, %v2152_v33  ;;  %v1098_v17 = vsel %vm1070_vm5, %v4164_v62, %v4862_v41 }
 0x22c   : > { %v2155_v16 = vcombine.low %v1740_v53, %v1742_v3  ;;  %v605_v57 = vpop.permute.xlu1 %604  ;;  %v2162_v32 = vrot.slane %v2154_v43, %v3635_v46 }
 0x22d   : > { %2869 = vmatmul.mubr.msk.f32.gmra.mrb[14].mxu1 %vm2213_vm12, %v2153_v52  ;;  %v690_v27 = vpop.permute.xlu0 %689  ;;  %v1155_v6 = vsel %vm1128_vm6, %v1126_v9, %v605_v57 }
 0x22e   : > { %v2169_v50 = vrot.slane %v2155_v16, %v3635_v46  ;;  %2871 = vmatprep.mubr.msk.f32.mxu1 %vm3040_vm3, %v4833_v1 }
 0x22f   : > { %v2364_v56 = vpop.f32.mrb[12].mxu0 }
 0x230   : > { %2464 = vst.msk [vmem:[%s4297_s14 + $0x30] sm:$0xff] %vm1099_vm4, %v2364_v56  ;;  %v2495_v24 = vsel %vm1099_vm4, %v2364_v56, 0.0  ;;  %v2545_v11 = vmul.f32 %v2364_v56, %v2364_v56  ;;  %v692_v14 = vpop.permute.xlu1 %691  ;;  %v2828_v48 = vpop.f32.mrb[13].mxu0  ;;  %v2170_v22 = vcombine.low %v2162_v32, %v2169_v50 }
 0x231   : > { %v2496_v60 = vadd.f32 %v2495_v24, %v4556_v55  ;;  %v777_v28 = vpop.permute.xlu0 %776  ;;  %v1154_v55 = vsel %vm1128_vm6, %v1125_v35, %v603_v61  ;;  %v1184_v5 = vsel %vm1157_vm7, %v1155_v6, %v692_v14 }
 0x232   : > { %v2575_v12 = vsel %vm1099_vm4, %v2545_v11, 0.0  ;;  %2872 = vmatmul.mubr.msk.f32.gmra.mrb[16].mxu1 %vm2213_vm12, %v2170_v22  ;;  %v1183_v47 = vsel %vm1157_vm7, %v1154_v55, %v690_v27 }
 0x233   : > { %v2576_v18 = vadd.f32 %v2575_v12, %v4561_v21  ;;  %2874 = vmatprep.mubr.msk.f32.mxu1 %vm3040_vm3, %v4833_v1  ;;  %v1212_v19 = vsel %vm1186_vm8, %v1183_v47, %v777_v28 }
 0x234   : > { %v779_v15 = vpop.permute.xlu1 %778 }
 0x235   : > { %v863_v2 = vpop.permute.xlu0 %862  ;;  %v1213_v39 = vsel %vm1186_vm8, %v1184_v5, %v779_v15 }
 0x236   : > { %v1241_v21 = vsel %vm1215_vm9, %v1212_v19, %v863_v2 }
 0x238   : > { %v521_v45 = vpop.permute.xlu1 %520 }
 0x239   : > { %v950_v44 = vpop.permute.xlu0 %949  ;;  %v1127_v3 = vsel %vm1099_vm4, %v1098_v17, %v521_v45 }
 0x23a   : > { %v1270_v29 = vsel %vm1244_vm10, %v1241_v21, %v950_v44 }
 0x23c   : > { %v1037_v59 = vpop.permute.xlu1 %1036 }
 0x23d   : > { %v1299_v36 = vsel %vm1273_vm11, %v1270_v29, %v1037_v59  ;;  %v865_v49 = vpop.permute.xlu0 %864 }
 0x23e   : > { %v1750_v8 = vrot.slane %v1299_v36, %v3635_v46  ;;  %v1743_v30 = vcombine.high %v1299_v36, %v1299_v36  ;;  %v1242_v58 = vsel %vm1215_vm9, %v1213_v39, %v865_v49 }
 0x240   : > { %v952_v25 = vpop.permute.xlu1 %951  ;;  %v1758_v20 = vcombine.high %v1750_v8, %v1750_v8  ;;  %v1757_v7 = vrot.slane %v1743_v30, %v3635_v46 }
 0x241   : > { %v607_v42 = vpop.permute.xlu0 %606  ;;  %v2369_v10 = vpop.f32.mrb[14].mxu0  ;;  %v1271_v63 = vsel %vm1244_vm10, %v1242_v58, %v952_v25 }
 0x242   : > { %2465 = vst.msk [vmem:[%s4297_s14 + $0x38] sm:$0xff] %vm1099_vm4, %v2369_v10  ;;  %v2497_v31 = vsel %vm1099_vm4, %v2369_v10, 0.0  ;;  %v2546_v54 = vmul.f32 %v2369_v10, %v2369_v10  ;;  %v2831_v51 = vpop.f32.mrb[15].mxu0  ;;  %v2171_v33 = vcombine.low %v1750_v8, %v1758_v20  ;;  %v1156_v43 = vsel %vm1128_vm6, %v1127_v3, %v607_v42 }
 0x243   : > { %v2498_v0 = vadd.f32 %v2497_v31, %v2496_v60 }
 0x244   : > { %v2577_v26 = vsel %vm1099_vm4, %v2546_v54, 0.0  ;;  %v1039_v23 = vpop.permute.xlu1 %1038  ;;  %v2179_v50 = vrot.slane %v2171_v33, %v3635_v46 }
 0x245   : > { %v2578_v4 = vadd.f32 %v2577_v26, %v2576_v18  ;;  %v1300_v37 = vsel %vm1273_vm11, %v1271_v63, %v1039_v23  ;;  %v694_v53 = vpop.permute.xlu0 %693 }
 0x246   : > { %v1766_v61 = vrot.slane %v1300_v37, %v3635_v46  ;;  %v1759_v52 = vcombine.high %v1300_v37, %v1300_v37  ;;  %v1185_v27 = vsel %vm1157_vm7, %v1156_v43, %v694_v53 }
 0x248   : > { %v2172_v16 = vcombine.low %v1757_v7, %v1766_v61  ;;  %v867_v57 = vpop.permute.xlu1 %866  ;;  %v1773_v24 = vrot.slane %v1759_v52, %v3635_v46  ;;  %v1774_v11 = vcombine.high %v1766_v61, %v1766_v61 }
 0x249   : > { %v781_v32 = vpop.permute.xlu0 %780 }
 0x24a   : > { %v2186_v56 = vrot.slane %v2172_v16, %v3635_v46  ;;  %v1214_v62 = vsel %vm1186_vm8, %v1185_v27, %v781_v32  ;;  %v2188_v15 = vcombine.low %v1774_v11, %v1773_v24  ;;  %v1775_v2 = vcombine.high %v1773_v24, %v1773_v24 }
 0x24b   : > { %v1243_v22 = vsel %vm1215_vm9, %v1214_v62, %v867_v57 }
 0x24c   : > { %v1041_v14 = vpop.permute.xlu1 %1040  ;;  %v2187_v48 = vcombine.low %v2179_v50, %v2186_v56  ;;  %v2196_v44 = vrot.slane %v2188_v15, %v3635_v46 }
 0x24d   : > { %v954_v60 = vpop.permute.xlu0 %953 }
 0x24e   : > { %v1272_v28 = vsel %vm1244_vm10, %v1243_v22, %v954_v60  ;;  %2875 = vmatmul.mubr.msk.f32.gmra.mrb[18].mxu1 %vm2213_vm12, %v2187_v48 }
 0x24f   : > { %v1301_v12 = vsel %vm1273_vm11, %v1272_v28, %v1041_v14  ;;  %v4651_v18 = vpop.f32.mrb[0].mxu1  ;;  %2877 = vmatprep.mubr.msk.f32.mxu1 %vm3040_vm3, %v4833_v1 }
 0x250   : > { %v1776_v38 = vcombine.high %v1301_v12, %v1301_v12  ;;  %v1783_v34 = vrot.slane %v1301_v12, %v3635_v46  ;;  %2471 = vst.msk [vmem:[%s4297_s14 + $0x68] sm:$0xff] %vm1099_vm4, %v4651_v18  ;;  %v2849_v35 = vpop.f32.mrb[1].mxu1  ;;  %v2552_v27 = vmul.f32 %v4651_v18, %v4651_v18  ;;  %v2509_v24 = vsel %vm1099_vm4, %v4651_v18, 0.0 }
 0x252   : > { %v1790_v55 = vrot.slane %v1776_v38, %v3635_v46  ;;  %v1791_v45 = vcombine.high %v1783_v34, %v1783_v34  ;;  %v2189_v47 = vcombine.low %v1775_v2, %v1783_v34  ;;  %v2589_v60 = vsel %vm1099_vm4, %v2552_v27, 0.0 }
 0x254   : > { %v2203_v19 = vrot.slane %v2189_v47, %v3635_v46  ;;  %v2205_v21 = vcombine.low %v1791_v45, %v1790_v55 }
 0x256   : > { %v2204_v29 = vcombine.low %v2196_v44, %v2203_v19  ;;  %v2212_v59 = vrot.slane %v2205_v21, %v3635_v46 }
 0x258   : > { %2878 = vmatmul.mubr.msk.f32.gmra.mrb[20].mxu1 %vm2213_vm12, %v2204_v29 }
 0x259   : > { %2880 = vmatprep.mubr.msk.f32.mxu1 %vm3040_vm3, %v4833_v1 }
 0x25c   : > { %2881 = vmatmul.mubr.msk.f32.gmra.mrb[22].mxu1 %vm2213_vm12, %v2212_v59 }
 0x261   : > { %v2404_v13 = vpop.f32.mrb[2].mxu1 }
 0x262   : > { %2472 = vst.msk [vmem:[%s4297_s14 + $0x70] sm:$0xff] %vm1099_vm4, %v2404_v13  ;;  %v2852_v40 = vpop.f32.mrb[3].mxu1  ;;  %v2553_v11 = vmul.f32 %v2404_v13, %v2404_v13  ;;  %v2511_v28 = vsel %vm1099_vm4, %v2404_v13, 0.0 }
 0x264   : > { %v2591_v38 = vsel %vm1099_vm4, %v2553_v11, 0.0 }
 0x27d   : > { %v2374_v36 = vpop.f32.mrb[16].mxu0 }
 0x27e   : > { %2466 = vst.msk [vmem:[%s4297_s14 + $0x40] sm:$0xff] %vm1099_vm4, %v2374_v36  ;;  %v2499_v49 = vsel %vm1099_vm4, %v2374_v36, 0.0  ;;  %v2547_v9 = vmul.f32 %v2374_v36, %v2374_v36  ;;  %v2834_v8 = vpop.f32.mrb[17].mxu0 }
 0x27f   : > { %v2500_v6 = vadd.f32 %v2499_v49, %v2498_v0 }
 0x280   : > { %v2579_v1 = vsel %vm1099_vm4, %v2547_v9, 0.0 }
 0x281   : > { %v2580_v5 = vadd.f32 %v2579_v1, %v2578_v4 }
 0x2a1   : > { %v2379_v46 = vpop.f32.mrb[18].mxu0 }
 0x2a2   : > { %2467 = vst.msk [vmem:[%s4297_s14 + $0x48] sm:$0xff] %vm1099_vm4, %v2379_v46  ;;  %v2501_v25 = vsel %vm1099_vm4, %v2379_v46, 0.0  ;;  %v2548_v39 = vmul.f32 %v2379_v46, %v2379_v46  ;;  %v2837_v42 = vpop.f32.mrb[19].mxu0 }
 0x2a3   : > { %v2502_v10 = vadd.f32 %v2501_v25, %v2500_v6 }
 0x2a4   : > { %v2581_v30 = vsel %vm1099_vm4, %v2548_v39, 0.0 }
 0x2a5   : > { %v2409_v20 = vpop.f32.mrb[4].mxu1  ;;  %v2582_v31 = vadd.f32 %v2581_v30, %v2580_v5 }
 0x2a6   : > { %2473 = vst.msk [vmem:[%s4297_s14 + $0x78] sm:$0xff] %vm1099_vm4, %v2409_v20  ;;  %v2855_v54 = vpop.f32.mrb[5].mxu1  ;;  %v2554_v12 = vmul.f32 %v2409_v20, %v2409_v20  ;;  %v2513_v34 = vsel %vm1099_vm4, %v2409_v20, 0.0 }
 0x2a8   : > { %v2593_v45 = vsel %vm1099_vm4, %v2554_v12, 0.0 }
 0x2b8   : > { %v2384_v51 = vpop.f32.mrb[20].mxu0 }
 0x2b9   : > { %2468 = vst.msk [vmem:[%s4297_s14 + $0x50] sm:$0xff] %vm1099_vm4, %v2384_v51  ;;  %v2503_v58 = vsel %vm1099_vm4, %v2384_v51, 0.0  ;;  %v2549_v0 = vmul.f32 %v2384_v51, %v2384_v51  ;;  %v2840_v63 = vpop.f32.mrb[21].mxu0 }
 0x2ba   : > { %v2504_v26 = vadd.f32 %v2503_v58, %v2502_v10 }
 0x2bb   : > { %v2583_v23 = vsel %vm1099_vm4, %v2549_v0, 0.0 }
 0x2bc   : > { %v2584_v4 = vadd.f32 %v2583_v23, %v2582_v31 }
 0x2c1   : > { %v2414_v37 = vpop.f32.mrb[6].mxu1 }
 0x2c2   : > { %2474 = vst.msk [vmem:[%s4297_s14 + $0x80] sm:$0xff] %vm1099_vm4, %v2414_v37  ;;  %v2858_v53 = vpop.f32.mrb[7].mxu1  ;;  %v2555_v35 = vmul.f32 %v2414_v37, %v2414_v37  ;;  %v2515_v47 = vsel %vm1099_vm4, %v2414_v37, 0.0 }
 0x2c4   : > { %v2595_v29 = vsel %vm1099_vm4, %v2555_v35, 0.0 }
 0x2cf   : > { %v2419_v41 = vpop.f32.mrb[8].mxu1 }
 0x2d0   : > { %v2389_v17 = vpop.f32.mrb[22].mxu0  ;;  %2475 = vst.msk [vmem:[%s4297_s14 + $0x88] sm:$0xff] %vm1099_vm4, %v2419_v41  ;;  %v2861_v7 = vpop.f32.mrb[9].mxu1  ;;  %v2556_v44 = vmul.f32 %v2419_v41, %v2419_v41  ;;  %v2517_v59 = vsel %vm1099_vm4, %v2419_v41, 0.0 }
 0x2d1   : > { %2469 = vst.msk [vmem:[%s4297_s14 + $0x58] sm:$0xff] %vm1099_vm4, %v2389_v17  ;;  %v2505_v33 = vsel %vm1099_vm4, %v2389_v17, 0.0  ;;  %v2550_v61 = vmul.f32 %v2389_v17, %v2389_v17  ;;  %v2843_v3 = vpop.f32.mrb[23].mxu0 }
 0x2d2   : > { %v2506_v43 = vadd.f32 %v2505_v33, %v2504_v26  ;;  %v2597_v49 = vsel %vm1099_vm4, %v2556_v44, 0.0 }
 0x2d3   : > { %v2585_v52 = vsel %vm1099_vm4, %v2550_v61, 0.0 }
 0x2d4   : > { %v2586_v16 = vadd.f32 %v2585_v52, %v2584_v4  ;;  %v2394_v57 = vpop.f32.mrb[24].mxu0 }
 0x2d5   : > { %2470 = vst.msk [vmem:[%s4297_s14 + $0x60] sm:$0xff] %vm1099_vm4, %v2394_v57  ;;  %v2507_v32 = vsel %vm1099_vm4, %v2394_v57, 0.0  ;;  %v2551_v50 = vmul.f32 %v2394_v57, %v2394_v57  ;;  %v2846_v56 = vpop.f32.mrb[25].mxu0 }
 0x2d6   : > { %v2508_v62 = vadd.f32 %v2507_v32, %v2506_v43 }
 0x2d7   : > { %v2587_v14 = vsel %vm1099_vm4, %v2551_v50, 0.0 }
 0x2d8   : > { %v2510_v48 = vadd.f32 %v2509_v24, %v2508_v62  ;;  %v2588_v22 = vadd.f32 %v2587_v14, %v2586_v16 }
 0x2da   : > { %v2512_v15 = vadd.f32 %v2511_v28, %v2510_v48  ;;  %v2590_v2 = vadd.f32 %v2589_v60, %v2588_v22 }
 0x2dc   : > { %v2592_v55 = vadd.f32 %v2591_v38, %v2590_v2  ;;  %v2514_v18 = vadd.f32 %v2513_v34, %v2512_v15 }
 0x2de   : > { %v2516_v19 = vadd.f32 %v2515_v47, %v2514_v18  ;;  %v2594_v21 = vadd.f32 %v2593_v45, %v2592_v55 }
 0x2e0   : > { %v2424_v13 = vpop.f32.mrb[10].mxu1  ;;  %v2518_v40 = vadd.f32 %v2517_v59, %v2516_v19  ;;  %v2596_v36 = vadd.f32 %v2595_v29, %v2594_v21 }
 0x2e1   : > { %2476 = vst.msk [vmem:[%s4297_s14 + $0x90] sm:$0xff] %vm1099_vm4, %v2424_v13  ;;  %v2519_v9 = vsel %vm1099_vm4, %v2424_v13, 0.0  ;;  %v2557_v8 = vmul.f32 %v2424_v13, %v2424_v13  ;;  %v2864_v6 = vpop.f32.mrb[11].mxu1 }
 0x2e2   : > { %v2520_v1 = vadd.f32 %v2519_v9, %v2518_v40  ;;  %v2598_v5 = vadd.f32 %v2597_v49, %v2596_v36 }
 0x2e3   : > { %v2599_v46 = vsel %vm1099_vm4, %v2557_v8, 0.0 }
 0x2e4   : > { %v2600_v25 = vadd.f32 %v2599_v46, %v2598_v5 }
 0x2f0   : > { %v2429_v39 = vpop.f32.mrb[12].mxu1 }
 0x2f1   : > { %2477 = vst.msk [vmem:[%s4297_s14 + $0x98] sm:$0xff] %vm1099_vm4, %v2429_v39  ;;  %v2521_v42 = vsel %vm1099_vm4, %v2429_v39, 0.0  ;;  %v2558_v10 = vmul.f32 %v2429_v39, %v2429_v39  ;;  %v2867_v30 = vpop.f32.mrb[13].mxu1 }
 0x2f2   : > { %v2522_v20 = vadd.f32 %v2521_v42, %v2520_v1 }
 0x2f3   : > { %v2601_v31 = vsel %vm1099_vm4, %v2558_v10, 0.0 }
 0x2f4   : > { %v2602_v54 = vadd.f32 %v2601_v31, %v2600_v25 }
 0x300   : > { %v2434_v51 = vpop.f32.mrb[14].mxu1 }
 0x301   : > { %2478 = vst.msk [vmem:[%s4297_s14 + $0xa0] sm:$0xff] %vm1099_vm4, %v2434_v51  ;;  %v2523_v58 = vsel %vm1099_vm4, %v2434_v51, 0.0  ;;  %v2559_v0 = vmul.f32 %v2434_v51, %v2434_v51  ;;  %v2870_v63 = vpop.f32.mrb[15].mxu1 }
 0x302   : > { %v2524_v26 = vadd.f32 %v2523_v58, %v2522_v20 }
 0x303   : > { %v2603_v23 = vsel %vm1099_vm4, %v2559_v0, 0.0 }
 0x304   : > { %v2604_v4 = vadd.f32 %v2603_v23, %v2602_v54 }
 0x305   : > { %v2439_v37 = vpop.f32.mrb[16].mxu1 }
 0x306   : > { %2479 = vst.msk [vmem:[%s4297_s14 + $0xa8] sm:$0xff] %vm1099_vm4, %v2439_v37  ;;  %v2525_v53 = vsel %vm1099_vm4, %v2439_v37, 0.0  ;;  %v2560_v41 = vmul.f32 %v2439_v37, %v2439_v37  ;;  %v2873_v17 = vpop.f32.mrb[17].mxu1 }
 0x307   : > { %v2526_v7 = vadd.f32 %v2525_v53, %v2524_v26 }
 0x308   : > { %v2605_v33 = vsel %vm1099_vm4, %v2560_v41, 0.0 }
 0x309   : > { %v2606_v61 = vadd.f32 %v2605_v33, %v2604_v4 }
 0x321   : > { %v2444_v3 = vpop.f32.mrb[18].mxu1 }
 0x322   : > { %2480 = vst.msk [vmem:[%s4297_s14 + $0xb0] sm:$0xff] %vm1099_vm4, %v2444_v3  ;;  %v2527_v43 = vsel %vm1099_vm4, %v2444_v3, 0.0  ;;  %v2561_v52 = vmul.f32 %v2444_v3, %v2444_v3  ;;  %v2876_v16 = vpop.f32.mrb[19].mxu1 }
 0x323   : > { %v2528_v57 = vadd.f32 %v2527_v43, %v2526_v7 }
 0x324   : > { %v2607_v27 = vsel %vm1099_vm4, %v2561_v52, 0.0 }
 0x325   : > { %v2608_v32 = vadd.f32 %v2607_v27, %v2606_v61 }
 0x32b   : > { %v2449_v50 = vpop.f32.mrb[20].mxu1 }
 0x32c   : > { %2481 = vst.msk [vmem:[%s4297_s14 + $0xb8] sm:$0xff] %vm1099_vm4, %v2449_v50  ;;  %v2529_v56 = vsel %vm1099_vm4, %v2449_v50, 0.0  ;;  %v2562_v62 = vmul.f32 %v2449_v50, %v2449_v50  ;;  %v2879_v24 = vpop.f32.mrb[21].mxu1 }
 0x32d   : > { %v2530_v11 = vadd.f32 %v2529_v56, %v2528_v57 }
 0x32e   : > { %v2609_v14 = vsel %vm1099_vm4, %v2562_v62, 0.0 }
 0x32f   : > { %v2610_v48 = vadd.f32 %v2609_v14, %v2608_v32  ;;  %v2454_v22 = vpop.f32.mrb[22].mxu1 }
 0x330   : > { %2483 = vst.msk [vmem:[%s4297_s14 + $0xc0] sm:$0xf] %vm2482_vm13, %v2454_v22  ;;  %v2531_v60 = vsel %vm2482_vm13, %v2454_v22, 0.0  ;;  %v2563_v28 = vmul.f32 %v2454_v22, %v2454_v22  ;;  %v2882_v12 = vpop.f32.mrb[23].mxu1 }
 0x331   : > { %v2532_v15 = vadd.f32 %v2531_v60, %v2530_v11 }
 0x332   : > { %v2611_v2 = vsel %vm2482_vm13, %v2563_v28, 0.0 }
 0x333   : > { %v2533_v38 = vrot.slane %v2532_v15, 4  ;;  %v2612_v34 = vadd.f32 %v2611_v2, %v2610_v48 }
 0x335   : > { %v2534_v35 = vadd.f32 %v2533_v38, %v2532_v15  ;;  %v2613_v55 = vrot.slane %v2612_v34, 4 }
 0x337   : > { %v2535_v18 = vrot.slane %v2534_v35, 2  ;;  %v2614_v45 = vadd.f32 %v2613_v55, %v2612_v34 }
 0x339   : > { %v2536_v47 = vadd.f32 %v2535_v18, %v2534_v35  ;;  %v2615_v44 = vrot.slane %v2614_v45, 2 }
 0x33b   : > { %v2537_v19 = vrot.slane %v2536_v47, 1  ;;  %v2616_v21 = vadd.f32 %v2615_v44, %v2614_v45 }
 0x33d   : > { %v2617_v29 = vrot.slane %v2616_v21, 1  ;;  %v2538_v59 = vadd.f32 %v2537_v19, %v2536_v47 }
 0x33f   : > { %v2618_v13 = vadd.f32 %v2617_v29, %v2616_v21 }
 0x341   : > { %v2620_v40 = vsel %vm2619_vm14, %v2538_v59, %v2618_v13 }
 0x342   : > { %2622 = vst.msk [vmem:[%s225_s15] sm:$0x3] %vm2621_vm15, %v2620_v40 }
 0x343   : > { %2980 = shalt.err (!%p2977_p3)
}
 0x344   : > { %s2981_s8 = scalar_lea.hbm %s4738_s23, 32  ;;  %s2985_s28 = scalar_lea.hbm %s4785_s5, 64 }
 0x345   : > { %p2982_p4 = scmp.ne.s32.totalorder %s4738_s23, %s2981_s8  ;;  %p2986_p9 = scmp.lt.u32.totalorder %s4738_s23, %s4785_s5 }
 0x346   : > { %p2987_p10 = scmp.lt.u32.totalorder %s2985_s28, %s2981_s8  ;;  %p2989_p12 = scmp.lt.u32.totalorder %s2981_s8, %s4738_s23 }
 0x347   : > { %p2983_p7 = pnand %p2982_p4, %p3112_p5 }
 0x348   : > { %p2988_p11 = por %p2987_p10, %p2986_p9 }
 0x349   : > { %p2984_p8 = pneg %p2983_p7 }
 0x34a   : > { %p2990_p13 = por %p2989_p12, %p2988_p11 }
 0x34c   : > { %p2991_p0 = pnand %p2990_p13, %p2984_p8 }
 0x34e   : > { %2994 = shalt.err (!%p2991_p0)
}
 0x34f   : > { %2896 = dma.vmem_to_hbm [thread:$0]  (%p3112_p5), %s4740_s16, 32, %s4738_s23, %s2629_s24  }
 0x350 PF: > { %p2902_p1 = scmp.ge.s32.totalorder %s3029_s21, 2  ;;  %s2665_s7 = sand.u32 1, %s3017_s18  }
 0x351   : > { %s2666_s9 = scalar_lea.sflag [#allocation3], %s2665_s7 }
 0x352   : > { %p2899_p2 = pnand %p2902_p1, %p3116_p6 }
 0x354   : > { %3012 = dma.done.wait (!%p2899_p2), %s2666_s9, 32  }
 0x355   : > { %3014 = vsyncadd (!%p2899_p2), %s2666_s9, 4294967264  ;;  %p16_p3 = scmp.ge.s32.totalorder %s3099_s22, 4   ;;  %s4863_s18 = smov %s3021_s19 }
 0x356   : > { %s4864_s19 = smov %s3025_s20  ;;  %s4865_s20 = smov %s3110_s25 }
 0x357   : > { %s4866_s21 = smov %s3099_s22  ;;  %18 = sbr.rel (!%p16_p3) target bundleno = 3 (0x3), region = 83 }
 0x35e   :  { %2671 = vsyncpa [#allocation3], 1 }
 0x35f   :  { %2673 = vsyncpa [#allocation3 + $0x1], 1 }

</bundles_post_ra>
